<compile_context>
chip_gen: v6e
topology: v6e:2x2x1
jax: 0.10.0
libtpu: 0.0.40
codegen_flags: <defaults>
</compile_context>

<pallas_src>
import functools

import jax
import jax.numpy as jnp
import numpy as np
from jax import lax
from jax.experimental import pallas as pl
from jax.experimental.pallas import tpu as pltpu

EPS = float(jnp.finfo(jnp.float32).eps)  # torch.nn.RMSNorm(eps=None) for fp32


def _rmsnorm(x, w):
    ms = jnp.mean(x * x, axis=-1, keepdims=True)
    return x * lax.rsqrt(ms + EPS) * w


# --------------------------------------------------------------------------
# Kernel
# --------------------------------------------------------------------------
def _block_kernel(num_heads, hid_tile,
                  x_ref, ln1_ref, wqkv_ref, wproj_ref, bproj_ref,
                  ln2_ref, win_ref, bin_ref,
                  w12_ref, b12_ref, w3_ref, b3_ref, wout_ref, bout_ref,
                  out_ref,
                  xres_sc, h0_sc, sacc_sc):
    c = pl.program_id(1)
    nc = pl.num_programs(1)
    bf16 = jnp.bfloat16

    # ---- chunk 0: attention + residual + FFN input projection (kept resident) ----
    @pl.when(c == 0)
    def _attention_and_h0():
        x = x_ref[0]                                    # (T, C) f32
        T, C = x.shape
        H = num_heads
        hs = C // H
        scale = float(hs) ** -0.5

        xn = _rmsnorm(x, ln1_ref[0]).astype(bf16)
        qkv = jnp.dot(xn, wqkv_ref[...], preferred_element_type=jnp.float32)
        q = (qkv[:, :C] * scale).astype(bf16)           # fold 1/sqrt(hs) into q once
        k = qkv[:, C:2 * C].astype(bf16)
        v = qkv[:, 2 * C:].astype(bf16)

        # TODO(synk): causal mask intentionally not applied (decode=False default).
        head_outs = []
        for h in range(H):                              # static unroll over heads
            sl = slice(h * hs, (h + 1) * hs)
            qh, kh, vh = q[:, sl], k[:, sl], v[:, sl]
            # q @ k.T via dot_general contracting on the head dim (no explicit .T)
            s = lax.dot_general(qh, kh, (((1,), (1,)), ((), ())),
                                preferred_element_type=jnp.float32)
            s = s - jnp.max(s, axis=-1, keepdims=True)
            p = jnp.exp(s)
            p = p * pl.reciprocal(jnp.sum(p, axis=-1, keepdims=True), approx=True)
            head_outs.append(
                jnp.dot(p.astype(bf16), vh,
                        preferred_element_type=jnp.float32).astype(bf16))
        att_cat = jnp.concatenate(head_outs, axis=-1)   # (T, C) bf16, lane-dense

        att = jnp.dot(att_cat, wproj_ref[...],
                      preferred_element_type=jnp.float32) + bproj_ref[0]
        x1 = x + att
        xres_sc[...] = x1

        xn2 = _rmsnorm(x1, ln2_ref[0]).astype(bf16)
        h0 = jnp.dot(xn2, win_ref[...],
                     preferred_element_type=jnp.float32) + bin_ref[0]
        h0_sc[...] = h0.astype(bf16)
        sacc_sc[...] = jnp.zeros_like(sacc_sc)

    # ---- every chunk: fused (w1|w2) tile, SwiGLU, accumulate through w3 tile ----
    h0 = h0_sc[...]                                                 # (T, 4C) bf16
    a12 = jnp.dot(h0, w12_ref[...],
                  preferred_element_type=jnp.float32) + b12_ref[0]  # (T, 2*tc)
    a1 = a12[:, :hid_tile]
    a2 = a12[:, hid_tile:]
    sig = pl.reciprocal(1.0 + jnp.exp(-a1), approx=True)            # EUP sigmoid
    hidden = (a1 * sig * a2).astype(bf16)                           # SwiGLU chunk
    sacc_sc[...] += jnp.dot(hidden, w3_ref[...],
                            preferred_element_type=jnp.float32)

    # ---- last chunk: output projection + second residual ----
    @pl.when(c == nc - 1)
    def _finalize():
        s_full = (sacc_sc[...] + b3_ref[0]).astype(bf16)
        ff = jnp.dot(s_full, wout_ref[...],
                     preferred_element_type=jnp.float32) + bout_ref[0]
        out_ref[0] = xres_sc[...] + ff


# --------------------------------------------------------------------------
# Wrapper
# --------------------------------------------------------------------------
def _pick_hidden_tile(hid):
    if hid % 128 != 0:
        return hid                      # tiny / unaligned models: keep whole dim
    for t in (512, 256, 128):
        if hid % t == 0:
            return t
    return hid


def _pack_params(raw, hid_tile):
    (ln1_w, wq, wk, wv, wproj, bproj, ln2_w, win, bin_,
     w1, b1, w2, b2, w3, b3, wout, bout) = raw
    C = wq.shape[0]
    H4 = 4 * C
    nc = H4 // hid_tile
    bf16, f32 = jnp.bfloat16, jnp.float32

    wqkv = jnp.concatenate([wq, wk, wv], axis=1).astype(bf16)        # (C, 3C)
    # interleave per-hidden-chunk column blocks of w1/w2 -> one (4C, 8C) weight
    w12 = jnp.concatenate(
        [w1.reshape(H4, nc, hid_tile), w2.reshape(H4, nc, hid_tile)],
        axis=-1).reshape(H4, 2 * H4).astype(bf16)
    b12 = jnp.concatenate(
        [b1.reshape(nc, hid_tile), b2.reshape(nc, hid_tile)],
        axis=-1).reshape(1, 2 * H4).astype(f32)

    return [
        ln1_w.reshape(1, C).astype(f32),
        wqkv,
        wproj.astype(bf16),
        bproj.reshape(1, C).astype(f32),
        ln2_w.reshape(1, C).astype(f32),
        win.astype(bf16),
        bin_.reshape(1, H4).astype(f32),
        w12,
        b12,
        w3.astype(bf16),
        b3.reshape(1, H4).astype(f32),
        wout.astype(bf16),
        bout.reshape(1, C).astype(f32),
    ]


def block_forward(x, raw_params, num_heads, hidden_tile=None):
    """x: (B, T, C) float32; raw_params: unfused f32 weights (see init_params)."""
    B, T, C = x.shape
    assert C % num_heads == 0
    H4 = 4 * C
    tc = _pick_hidden_tile(H4) if hidden_tile is None else hidden_tile
    assert H4 % tc == 0 and (tc == H4 or tc % 128 == 0)
    nc = H4 // tc
    params = _pack_params(raw_params, tc)
    (ln1_w, wqkv, wproj, bproj, ln2_w, win, bin_,
     w12, b12, w3, b3, wout, bout) = params

    def const_spec(arr):
        nd = arr.ndim
        return pl.BlockSpec(arr.shape, lambda b, c, _n=nd: (0,) * _n)

    in_specs = [
        pl.BlockSpec((1, T, C), lambda b, c: (b, 0, 0)),      # x
        const_spec(ln1_w), const_spec(wqkv), const_spec(wproj), const_spec(bproj),
        const_spec(ln2_w), const_spec(win), const_spec(bin_),
        pl.BlockSpec((H4, 2 * tc), lambda b, c: (0, c)),      # fused (w1|w2) chunk
        pl.BlockSpec((1, 2 * tc), lambda b, c: (0, c)),       # fused (b1|b2) chunk
        pl.BlockSpec((tc, H4), lambda b, c: (c, 0)),          # w3 row chunk
        const_spec(b3), const_spec(wout), const_spec(bout),
    ]

    flops = int(2 * B * T * (60 * C * C + 2 * T * C))
    transcendentals = int(B * (num_heads * T * T + 2 * T * H4 + 2 * T))
    bytes_accessed = int(120 * C * C + 80 * C + 8 * B * T * C)

    return pl.pallas_call(
        functools.partial(_block_kernel, num_heads, tc),
        out_shape=jax.ShapeDtypeStruct((B, T, C), jnp.float32),
        grid_spec=pltpu.PrefetchScalarGridSpec(
            num_scalar_prefetch=0,
            grid=(B, nc),
            in_specs=in_specs,
            out_specs=pl.BlockSpec((1, T, C), lambda b, c: (b, 0, 0)),
            scratch_shapes=[
                pltpu.VMEM((T, C), jnp.float32),     # x + attention (residual)
                pltpu.VMEM((T, H4), jnp.bfloat16),   # h0 = FFN input projection
                pltpu.VMEM((T, H4), jnp.float32),    # SwiGLU @ w3 accumulator
            ]),
        compiler_params=pltpu.CompilerParams(
            dimension_semantics=("parallel", "arbitrary")),
        cost_estimate=pl.CostEstimate(
            flops=flops, transcendentals=transcendentals,
            bytes_accessed=bytes_accessed),
    )(x, *params)


# --------------------------------------------------------------------------
# Pure-JAX reference (f32, unfused weights) — sanity check only
# --------------------------------------------------------------------------
def block_reference(x, raw, num_heads):
    (ln1_w, wq, wk, wv, wproj, bproj, ln2_w, win, bin_,
     w1, b1, w2, b2, w3, b3, wout, bout) = raw
    B, T, C = x.shape
    hs = C // num_heads

    xn = _rmsnorm(x, ln1_w)
    q = (xn @ wq).reshape(B, T, num_heads, hs)
    k = (xn @ wk).reshape(B, T, num_heads, hs)
    v = (xn @ wv).reshape(B, T, num_heads, hs)
    ww = jnp.einsum("bthd,bshd->bhts", q, k) * (hs ** -0.5)
    p = jax.nn.softmax(ww, axis=-1)
    att = jnp.einsum("bhts,bshd->bthd", p, v).reshape(B, T, C)
    x = x + att @ wproj + bproj

    xn2 = _rmsnorm(x, ln2_w)
    h0 = xn2 @ win + bin_
    hidden = jax.nn.silu(h0 @ w1 + b1) * (h0 @ w2 + b2)
    ff = (hidden @ w3 + b3) @ wout + bout
    return x + ff


def init_params(key, n_embd):
    C = n_embd
    C4 = 4 * C
    ks = jax.random.split(key, 15)
    std = 0.05

    def w(k, shape):
        return (std * jax.random.normal(k, shape)).astype(jnp.float32)

    return [
        jnp.ones((C,), jnp.float32),      # ln1
        w(ks[0], (C, C)),                 # wq
        w(ks[1], (C, C)),                 # wk
        w(ks[2], (C, C)),                 # wv
        w(ks[3], (C, C)),                 # wproj
        w(ks[4], (C,)),                   # bproj
        jnp.ones((C,), jnp.float32),      # ln2
        w(ks[5], (C, C4)),                # win
        w(ks[6], (C4,)),                  # bin
        w(ks[7], (C4, C4)),               # w1
        w(ks[8], (C4,)),                  # b1
        w(ks[9], (C4, C4)),               # w2
        w(ks[10], (C4,)),                 # b2
        w(ks[11], (C4, C4)),              # w3
        w(ks[12], (C4,)),                 # b3
        w(ks[13], (C4, C)),               # wout
        w(ks[14], (C,)),                  # bout
    ]


if __name__ == "__main__":
    # Lane-dense C (multiple of 128); even B so a v7x megacore gets both cores busy.
    B, T, C = 2, 8, 128
    num_heads = 4

    key = jax.random.PRNGKey(0)
    k_x, k_p = jax.random.split(key)
    x = jax.random.normal(k_x, (B, T, C), dtype=jnp.float32)
    raw = init_params(k_p, C)

    # hidden_tile=256 -> the 4C=512 SwiGLU hidden dim runs as 2 chunks, exercising
    # the streamed-weight / VMEM-accumulator grid axis.
    out = jax.block_until_ready(block_forward(x, raw, num_heads, hidden_tile=256))
    ref = jax.block_until_ready(block_reference(x, raw, num_heads))

    assert out.shape == (B, T, C)
    assert bool(jnp.all(jnp.isfinite(out)))
    # bf16 matmuls (f32 accumulation) + approx EUP reciprocals vs f32 reference.
    np.testing.assert_allclose(np.asarray(out), np.asarray(ref),
                               rtol=2e-2, atol=2e-2)
    print("KERNEL_OK")
</pallas_src>

<mosaic_0001>
module attributes {stable_mosaic.version = 11 : i64} {
  func.func @_block_kernel(%arg0: i32, %arg1: i32, %arg2: memref<1x8x128xf32, #tpu.memory_space<vmem>>, %arg3: memref<1x128xf32, #tpu.memory_space<vmem>>, %arg4: memref<128x384xbf16, #tpu.memory_space<vmem>>, %arg5: memref<128x128xbf16, #tpu.memory_space<vmem>>, %arg6: memref<1x128xf32, #tpu.memory_space<vmem>>, %arg7: memref<1x128xf32, #tpu.memory_space<vmem>>, %arg8: memref<128x512xbf16, #tpu.memory_space<vmem>>, %arg9: memref<1x512xf32, #tpu.memory_space<vmem>>, %arg10: memref<512x512xbf16, #tpu.memory_space<vmem>>, %arg11: memref<1x512xf32, #tpu.memory_space<vmem>>, %arg12: memref<256x512xbf16, #tpu.memory_space<vmem>>, %arg13: memref<1x512xf32, #tpu.memory_space<vmem>>, %arg14: memref<512x128xbf16, #tpu.memory_space<vmem>>, %arg15: memref<1x128xf32, #tpu.memory_space<vmem>>, %arg16: memref<1x8x128xf32, #tpu.memory_space<vmem>>, %arg17: memref<8x128xf32, #tpu.memory_space<vmem>>, %arg18: memref<8x512xbf16, #tpu.memory_space<vmem>>, %arg19: memref<8x512xf32, #tpu.memory_space<vmem>>) attributes {dimension_semantics = [#tpu.dimension_semantics<parallel>, #tpu.dimension_semantics<arbitrary>], iteration_bounds = array<i64: 2, 2>, scalar_prefetch = 0 : i64, scratch_operands = 3 : i64, tpu.core_type = #tpu.core_type<tc>, window_params = [{transform_indices = @transform_0, window_bounds = array<i64: 1, 8, 128>}, {pipeline_mode = #tpu.pipeline_mode<synchronous>, transform_indices = @transform_1, window_bounds = array<i64: 1, 128>}, {pipeline_mode = #tpu.pipeline_mode<synchronous>, transform_indices = @transform_2, window_bounds = array<i64: 128, 384>}, {pipeline_mode = #tpu.pipeline_mode<synchronous>, transform_indices = @transform_3, window_bounds = array<i64: 128, 128>}, {pipeline_mode = #tpu.pipeline_mode<synchronous>, transform_indices = @transform_4, window_bounds = array<i64: 1, 128>}, {pipeline_mode = #tpu.pipeline_mode<synchronous>, transform_indices = @transform_5, window_bounds = array<i64: 1, 128>}, {pipeline_mode = #tpu.pipeline_mode<synchronous>, transform_indices = @transform_6, window_bounds = array<i64: 128, 512>}, {pipeline_mode = #tpu.pipeline_mode<synchronous>, transform_indices = @transform_7, window_bounds = array<i64: 1, 512>}, {transform_indices = @transform_8, window_bounds = array<i64: 512, 512>}, {transform_indices = @transform_9, window_bounds = array<i64: 1, 512>}, {transform_indices = @transform_10, window_bounds = array<i64: 256, 512>}, {pipeline_mode = #tpu.pipeline_mode<synchronous>, transform_indices = @transform_11, window_bounds = array<i64: 1, 512>}, {pipeline_mode = #tpu.pipeline_mode<synchronous>, transform_indices = @transform_12, window_bounds = array<i64: 512, 128>}, {pipeline_mode = #tpu.pipeline_mode<synchronous>, transform_indices = @transform_13, window_bounds = array<i64: 1, 128>}, {transform_indices = @transform_14, window_bounds = array<i64: 1, 8, 128>}]} {
    %c0_i32 = arith.constant 0 : i32
    %0 = arith.cmpi eq, %arg1, %c0_i32 : i32
    %1 = arith.extui %0 : i1 to i32
    %c0_i32_0 = arith.constant 0 : i32
    %2 = arith.cmpi ne, %1, %c0_i32_0 : i32
    scf.if %2 {
      %c0_16 = arith.constant 0 : index
      %c0_17 = arith.constant 0 : index
      %c0_18 = arith.constant 0 : index
      %30 = vector.load %arg2[%c0_16, %c0_17, %c0_18] : memref<1x8x128xf32, #tpu.memory_space<vmem>>, vector<1x8x128xf32>
      %31 = vector.shape_cast %30 : vector<1x8x128xf32> to vector<8x128xf32>
      %c0_19 = arith.constant 0 : index
      %c0_20 = arith.constant 0 : index
      %32 = vector.load %arg3[%c0_19, %c0_20] : memref<1x128xf32, #tpu.memory_space<vmem>>, vector<1x128xf32>
      %33 = vector.shape_cast %32 : vector<1x128xf32> to vector<128xf32>
      %34 = arith.mulf %31, %31 : vector<8x128xf32>
      %cst_21 = arith.constant dense<0.000000e+00> : vector<8xf32>
      %35 = vector.multi_reduction <add>, %34, %cst_21 [1] : vector<8x128xf32> to vector<8xf32>
      %36 = vector.shape_cast %35 : vector<8xf32> to vector<8x1xf32>
      %cst_22 = arith.constant 1.280000e+02 : f32
      %37 = vector.broadcast %cst_22 : f32 to vector<8x1xf32>
      %38 = arith.divf %36, %37 : vector<8x1xf32>
      %cst_23 = arith.constant 1.1920929E-7 : f32
      %39 = vector.broadcast %cst_23 : f32 to vector<8x1xf32>
      %40 = arith.addf %38, %39 : vector<8x1xf32>
      %41 = math.rsqrt %40 : vector<8x1xf32>
      %42 = vector.broadcast %41 : vector<8x1xf32> to vector<8x128xf32>
      %43 = arith.mulf %31, %42 : vector<8x128xf32>
      %44 = vector.shape_cast %33 : vector<128xf32> to vector<1x128xf32>
      %45 = vector.broadcast %44 : vector<1x128xf32> to vector<8x128xf32>
      %46 = arith.mulf %43, %45 : vector<8x128xf32>
      %47 = arith.truncf %46 : vector<8x128xf32> to vector<8x128xbf16>
      %c0_24 = arith.constant 0 : index
      %c0_25 = arith.constant 0 : index
      %48 = vector.load %arg4[%c0_24, %c0_25] : memref<128x384xbf16, #tpu.memory_space<vmem>>, vector<128x384xbf16>
      %cst_26 = arith.constant dense<0.000000e+00> : vector<8x384xf32>
      %49 = tpu.matmul %47, %48, %cst_26 {dimension_numbers = #tpu.dot_dimension_numbers<[1], [0], [0], [1], [0, 0, 1, 1], [], []>} : vector<8x128xbf16>, vector<128x384xbf16>, vector<8x384xf32> -> vector<8x384xf32>
      %50 = vector.extract_strided_slice %49 {offsets = [0, 0], sizes = [8, 128], strides = [1, 1]} : vector<8x384xf32> to vector<8x128xf32>
      %cst_27 = arith.constant 0.176776692 : f32
      %51 = vector.broadcast %cst_27 : f32 to vector<8x128xf32>
      %52 = arith.mulf %50, %51 : vector<8x128xf32>
      %53 = arith.truncf %52 : vector<8x128xf32> to vector<8x128xbf16>
      %54 = vector.extract_strided_slice %49 {offsets = [0, 128], sizes = [8, 128], strides = [1, 1]} : vector<8x384xf32> to vector<8x128xf32>
      %55 = arith.truncf %54 : vector<8x128xf32> to vector<8x128xbf16>
      %56 = vector.extract_strided_slice %49 {offsets = [0, 256], sizes = [8, 128], strides = [1, 1]} : vector<8x384xf32> to vector<8x128xf32>
      %57 = arith.truncf %56 : vector<8x128xf32> to vector<8x128xbf16>
      %58 = vector.extract_strided_slice %53 {offsets = [0, 0], sizes = [8, 32], strides = [1, 1]} : vector<8x128xbf16> to vector<8x32xbf16>
      %59 = vector.extract_strided_slice %55 {offsets = [0, 0], sizes = [8, 32], strides = [1, 1]} : vector<8x128xbf16> to vector<8x32xbf16>
      %60 = vector.extract_strided_slice %57 {offsets = [0, 0], sizes = [8, 32], strides = [1, 1]} : vector<8x128xbf16> to vector<8x32xbf16>
      %cst_28 = arith.constant dense<0.000000e+00> : vector<8x8xf32>
      %61 = tpu.matmul %58, %59, %cst_28 {dimension_numbers = #tpu.dot_dimension_numbers<[1], [1], [0], [0], [0, 0, 1, 0], [], []>} : vector<8x32xbf16>, vector<8x32xbf16>, vector<8x8xf32> -> vector<8x8xf32>
      %cst_29 = arith.constant dense<0xFF800000> : vector<8xf32>
      %62 = vector.multi_reduction <maximumf>, %61, %cst_29 [1] : vector<8x8xf32> to vector<8xf32>
      %63 = vector.shape_cast %62 : vector<8xf32> to vector<8x1xf32>
      %64 = vector.broadcast %63 : vector<8x1xf32> to vector<8x8xf32>
      %65 = arith.subf %61, %64 : vector<8x8xf32>
      %66 = math.exp %65 : vector<8x8xf32>
      %cst_30 = arith.constant dense<0.000000e+00> : vector<8xf32>
      %67 = vector.multi_reduction <add>, %66, %cst_30 [1] : vector<8x8xf32> to vector<8xf32>
      %68 = vector.shape_cast %67 : vector<8xf32> to vector<8x1xf32>
      %69 = tpu.reciprocal %68 {approx = true} : vector<8x1xf32> -> vector<8x1xf32>
      %70 = vector.broadcast %69 : vector<8x1xf32> to vector<8x8xf32>
      %71 = arith.mulf %66, %70 : vector<8x8xf32>
      %72 = arith.truncf %71 : vector<8x8xf32> to vector<8x8xbf16>
      %cst_31 = arith.constant dense<0.000000e+00> : vector<8x32xf32>
      %73 = tpu.matmul %72, %60, %cst_31 {dimension_numbers = #tpu.dot_dimension_numbers<[1], [0], [0], [1], [0, 0, 1, 1], [], []>} : vector<8x8xbf16>, vector<8x32xbf16>, vector<8x32xf32> -> vector<8x32xf32>
      %74 = arith.truncf %73 : vector<8x32xf32> to vector<8x32xbf16>
      %75 = vector.extract_strided_slice %53 {offsets = [0, 32], sizes = [8, 32], strides = [1, 1]} : vector<8x128xbf16> to vector<8x32xbf16>
      %76 = vector.extract_strided_slice %55 {offsets = [0, 32], sizes = [8, 32], strides = [1, 1]} : vector<8x128xbf16> to vector<8x32xbf16>
      %77 = vector.extract_strided_slice %57 {offsets = [0, 32], sizes = [8, 32], strides = [1, 1]} : vector<8x128xbf16> to vector<8x32xbf16>
      %cst_32 = arith.constant dense<0.000000e+00> : vector<8x8xf32>
      %78 = tpu.matmul %75, %76, %cst_32 {dimension_numbers = #tpu.dot_dimension_numbers<[1], [1], [0], [0], [0, 0, 1, 0], [], []>} : vector<8x32xbf16>, vector<8x32xbf16>, vector<8x8xf32> -> vector<8x8xf32>
      %cst_33 = arith.constant dense<0xFF800000> : vector<8xf32>
      %79 = vector.multi_reduction <maximumf>, %78, %cst_33 [1] : vector<8x8xf32> to vector<8xf32>
      %80 = vector.shape_cast %79 : vector<8xf32> to vector<8x1xf32>
      %81 = vector.broadcast %80 : vector<8x1xf32> to vector<8x8xf32>
      %82 = arith.subf %78, %81 : vector<8x8xf32>
      %83 = math.exp %82 : vector<8x8xf32>
      %cst_34 = arith.constant dense<0.000000e+00> : vector<8xf32>
      %84 = vector.multi_reduction <add>, %83, %cst_34 [1] : vector<8x8xf32> to vector<8xf32>
      %85 = vector.shape_cast %84 : vector<8xf32> to vector<8x1xf32>
      %86 = tpu.reciprocal %85 {approx = true} : vector<8x1xf32> -> vector<8x1xf32>
      %87 = vector.broadcast %86 : vector<8x1xf32> to vector<8x8xf32>
      %88 = arith.mulf %83, %87 : vector<8x8xf32>
      %89 = arith.truncf %88 : vector<8x8xf32> to vector<8x8xbf16>
      %cst_35 = arith.constant dense<0.000000e+00> : vector<8x32xf32>
      %90 = tpu.matmul %89, %77, %cst_35 {dimension_numbers = #tpu.dot_dimension_numbers<[1], [0], [0], [1], [0, 0, 1, 1], [], []>} : vector<8x8xbf16>, vector<8x32xbf16>, vector<8x32xf32> -> vector<8x32xf32>
      %91 = arith.truncf %90 : vector<8x32xf32> to vector<8x32xbf16>
      %92 = vector.extract_strided_slice %53 {offsets = [0, 64], sizes = [8, 32], strides = [1, 1]} : vector<8x128xbf16> to vector<8x32xbf16>
      %93 = vector.extract_strided_slice %55 {offsets = [0, 64], sizes = [8, 32], strides = [1, 1]} : vector<8x128xbf16> to vector<8x32xbf16>
      %94 = vector.extract_strided_slice %57 {offsets = [0, 64], sizes = [8, 32], strides = [1, 1]} : vector<8x128xbf16> to vector<8x32xbf16>
      %cst_36 = arith.constant dense<0.000000e+00> : vector<8x8xf32>
      %95 = tpu.matmul %92, %93, %cst_36 {dimension_numbers = #tpu.dot_dimension_numbers<[1], [1], [0], [0], [0, 0, 1, 0], [], []>} : vector<8x32xbf16>, vector<8x32xbf16>, vector<8x8xf32> -> vector<8x8xf32>
      %cst_37 = arith.constant dense<0xFF800000> : vector<8xf32>
      %96 = vector.multi_reduction <maximumf>, %95, %cst_37 [1] : vector<8x8xf32> to vector<8xf32>
      %97 = vector.shape_cast %96 : vector<8xf32> to vector<8x1xf32>
      %98 = vector.broadcast %97 : vector<8x1xf32> to vector<8x8xf32>
      %99 = arith.subf %95, %98 : vector<8x8xf32>
      %100 = math.exp %99 : vector<8x8xf32>
      %cst_38 = arith.constant dense<0.000000e+00> : vector<8xf32>
      %101 = vector.multi_reduction <add>, %100, %cst_38 [1] : vector<8x8xf32> to vector<8xf32>
      %102 = vector.shape_cast %101 : vector<8xf32> to vector<8x1xf32>
      %103 = tpu.reciprocal %102 {approx = true} : vector<8x1xf32> -> vector<8x1xf32>
      %104 = vector.broadcast %103 : vector<8x1xf32> to vector<8x8xf32>
      %105 = arith.mulf %100, %104 : vector<8x8xf32>
      %106 = arith.truncf %105 : vector<8x8xf32> to vector<8x8xbf16>
      %cst_39 = arith.constant dense<0.000000e+00> : vector<8x32xf32>
      %107 = tpu.matmul %106, %94, %cst_39 {dimension_numbers = #tpu.dot_dimension_numbers<[1], [0], [0], [1], [0, 0, 1, 1], [], []>} : vector<8x8xbf16>, vector<8x32xbf16>, vector<8x32xf32> -> vector<8x32xf32>
      %108 = arith.truncf %107 : vector<8x32xf32> to vector<8x32xbf16>
      %109 = vector.extract_strided_slice %53 {offsets = [0, 96], sizes = [8, 32], strides = [1, 1]} : vector<8x128xbf16> to vector<8x32xbf16>
      %110 = vector.extract_strided_slice %55 {offsets = [0, 96], sizes = [8, 32], strides = [1, 1]} : vector<8x128xbf16> to vector<8x32xbf16>
      %111 = vector.extract_strided_slice %57 {offsets = [0, 96], sizes = [8, 32], strides = [1, 1]} : vector<8x128xbf16> to vector<8x32xbf16>
      %cst_40 = arith.constant dense<0.000000e+00> : vector<8x8xf32>
      %112 = tpu.matmul %109, %110, %cst_40 {dimension_numbers = #tpu.dot_dimension_numbers<[1], [1], [0], [0], [0, 0, 1, 0], [], []>} : vector<8x32xbf16>, vector<8x32xbf16>, vector<8x8xf32> -> vector<8x8xf32>
      %cst_41 = arith.constant dense<0xFF800000> : vector<8xf32>
      %113 = vector.multi_reduction <maximumf>, %112, %cst_41 [1] : vector<8x8xf32> to vector<8xf32>
      %114 = vector.shape_cast %113 : vector<8xf32> to vector<8x1xf32>
      %115 = vector.broadcast %114 : vector<8x1xf32> to vector<8x8xf32>
      %116 = arith.subf %112, %115 : vector<8x8xf32>
      %117 = math.exp %116 : vector<8x8xf32>
      %cst_42 = arith.constant dense<0.000000e+00> : vector<8xf32>
      %118 = vector.multi_reduction <add>, %117, %cst_42 [1] : vector<8x8xf32> to vector<8xf32>
      %119 = vector.shape_cast %118 : vector<8xf32> to vector<8x1xf32>
      %120 = tpu.reciprocal %119 {approx = true} : vector<8x1xf32> -> vector<8x1xf32>
      %121 = vector.broadcast %120 : vector<8x1xf32> to vector<8x8xf32>
      %122 = arith.mulf %117, %121 : vector<8x8xf32>
      %123 = arith.truncf %122 : vector<8x8xf32> to vector<8x8xbf16>
      %cst_43 = arith.constant dense<0.000000e+00> : vector<8x32xf32>
      %124 = tpu.matmul %123, %111, %cst_43 {dimension_numbers = #tpu.dot_dimension_numbers<[1], [0], [0], [1], [0, 0, 1, 1], [], []>} : vector<8x8xbf16>, vector<8x32xbf16>, vector<8x32xf32> -> vector<8x32xf32>
      %125 = arith.truncf %124 : vector<8x32xf32> to vector<8x32xbf16>
      %126 = tpu.concatenate %74, %91, %108, %125 in 1 : vector<8x32xbf16>, vector<8x32xbf16>, vector<8x32xbf16>, vector<8x32xbf16> -> vector<8x128xbf16>
      %c0_44 = arith.constant 0 : index
      %c0_45 = arith.constant 0 : index
      %127 = vector.load %arg5[%c0_44, %c0_45] : memref<128x128xbf16, #tpu.memory_space<vmem>>, vector<128x128xbf16>
      %cst_46 = arith.constant dense<0.000000e+00> : vector<8x128xf32>
      %128 = tpu.matmul %126, %127, %cst_46 {dimension_numbers = #tpu.dot_dimension_numbers<[1], [0], [0], [1], [0, 0, 1, 1], [], []>} : vector<8x128xbf16>, vector<128x128xbf16>, vector<8x128xf32> -> vector<8x128xf32>
      %c0_47 = arith.constant 0 : index
      %c0_48 = arith.constant 0 : index
      %129 = vector.load %arg6[%c0_47, %c0_48] : memref<1x128xf32, #tpu.memory_space<vmem>>, vector<1x128xf32>
      %130 = vector.shape_cast %129 : vector<1x128xf32> to vector<128xf32>
      %131 = vector.shape_cast %130 : vector<128xf32> to vector<1x128xf32>
      %132 = vector.broadcast %131 : vector<1x128xf32> to vector<8x128xf32>
      %133 = arith.addf %128, %132 : vector<8x128xf32>
      %134 = arith.addf %31, %133 : vector<8x128xf32>
      %c0_49 = arith.constant 0 : index
      %c0_50 = arith.constant 0 : index
      %135 = vector.load %arg17[%c0_49, %c0_50] : memref<8x128xf32, #tpu.memory_space<vmem>>, vector<8x128xf32>
      tpu.vector_store %arg17[%c0_49, %c0_50], %134 {strides = array<i32>} : memref<8x128xf32, #tpu.memory_space<vmem>>, vector<8x128xf32>,
      %c0_51 = arith.constant 0 : index
      %c0_52 = arith.constant 0 : index
      %136 = vector.load %arg7[%c0_51, %c0_52] : memref<1x128xf32, #tpu.memory_space<vmem>>, vector<1x128xf32>
      %137 = vector.shape_cast %136 : vector<1x128xf32> to vector<128xf32>
      %138 = arith.mulf %134, %134 : vector<8x128xf32>
      %cst_53 = arith.constant dense<0.000000e+00> : vector<8xf32>
      %139 = vector.multi_reduction <add>, %138, %cst_53 [1] : vector<8x128xf32> to vector<8xf32>
      %140 = vector.shape_cast %139 : vector<8xf32> to vector<8x1xf32>
      %cst_54 = arith.constant 1.280000e+02 : f32
      %141 = vector.broadcast %cst_54 : f32 to vector<8x1xf32>
      %142 = arith.divf %140, %141 : vector<8x1xf32>
      %cst_55 = arith.constant 1.1920929E-7 : f32
      %143 = vector.broadcast %cst_55 : f32 to vector<8x1xf32>
      %144 = arith.addf %142, %143 : vector<8x1xf32>
      %145 = math.rsqrt %144 : vector<8x1xf32>
      %146 = vector.broadcast %145 : vector<8x1xf32> to vector<8x128xf32>
      %147 = arith.mulf %134, %146 : vector<8x128xf32>
      %148 = vector.shape_cast %137 : vector<128xf32> to vector<1x128xf32>
      %149 = vector.broadcast %148 : vector<1x128xf32> to vector<8x128xf32>
      %150 = arith.mulf %147, %149 : vector<8x128xf32>
      %151 = arith.truncf %150 : vector<8x128xf32> to vector<8x128xbf16>
      %c0_56 = arith.constant 0 : index
      %c0_57 = arith.constant 0 : index
      %152 = vector.load %arg8[%c0_56, %c0_57] : memref<128x512xbf16, #tpu.memory_space<vmem>>, vector<128x512xbf16>
      %cst_58 = arith.constant dense<0.000000e+00> : vector<8x512xf32>
      %153 = tpu.matmul %151, %152, %cst_58 {dimension_numbers = #tpu.dot_dimension_numbers<[1], [0], [0], [1], [0, 0, 1, 1], [], []>} : vector<8x128xbf16>, vector<128x512xbf16>, vector<8x512xf32> -> vector<8x512xf32>
      %c0_59 = arith.constant 0 : index
      %c0_60 = arith.constant 0 : index
      %154 = vector.load %arg9[%c0_59, %c0_60] : memref<1x512xf32, #tpu.memory_space<vmem>>, vector<1x512xf32>
      %155 = vector.shape_cast %154 : vector<1x512xf32> to vector<512xf32>
      %156 = vector.shape_cast %155 : vector<512xf32> to vector<1x512xf32>
      %157 = vector.broadcast %156 : vector<1x512xf32> to vector<8x512xf32>
      %158 = arith.addf %153, %157 : vector<8x512xf32>
      %159 = arith.truncf %158 : vector<8x512xf32> to vector<8x512xbf16>
      %c0_61 = arith.constant 0 : index
      %c0_62 = arith.constant 0 : index
      %160 = vector.load %arg18[%c0_61, %c0_62] : memref<8x512xbf16, #tpu.memory_space<vmem>>, vector<8x512xbf16>
      tpu.vector_store %arg18[%c0_61, %c0_62], %159 {strides = array<i32>} : memref<8x512xbf16, #tpu.memory_space<vmem>>, vector<8x512xbf16>,
      %cst_63 = arith.constant 0.000000e+00 : f32
      %161 = vector.broadcast %cst_63 : f32 to vector<8x512xf32>
      %c0_64 = arith.constant 0 : index
      %c0_65 = arith.constant 0 : index
      %162 = vector.load %arg19[%c0_64, %c0_65] : memref<8x512xf32, #tpu.memory_space<vmem>>, vector<8x512xf32>
      tpu.vector_store %arg19[%c0_64, %c0_65], %161 {strides = array<i32>} : memref<8x512xf32, #tpu.memory_space<vmem>>, vector<8x512xf32>,
    } else {
    }
    %c0 = arith.constant 0 : index
    %c0_1 = arith.constant 0 : index
    %3 = vector.load %arg18[%c0, %c0_1] : memref<8x512xbf16, #tpu.memory_space<vmem>>, vector<8x512xbf16>
    %c0_2 = arith.constant 0 : index
    %c0_3 = arith.constant 0 : index
    %4 = vector.load %arg10[%c0_2, %c0_3] : memref<512x512xbf16, #tpu.memory_space<vmem>>, vector<512x512xbf16>
    %cst = arith.constant dense<0.000000e+00> : vector<8x512xf32>
    %5 = tpu.matmul %3, %4, %cst {dimension_numbers = #tpu.dot_dimension_numbers<[1], [0], [0], [1], [0, 0, 1, 1], [], []>} : vector<8x512xbf16>, vector<512x512xbf16>, vector<8x512xf32> -> vector<8x512xf32>
    %c0_4 = arith.constant 0 : index
    %c0_5 = arith.constant 0 : index
    %6 = vector.load %arg11[%c0_4, %c0_5] : memref<1x512xf32, #tpu.memory_space<vmem>>, vector<1x512xf32>
    %7 = vector.shape_cast %6 : vector<1x512xf32> to vector<512xf32>
    %8 = vector.shape_cast %7 : vector<512xf32> to vector<1x512xf32>
    %9 = vector.broadcast %8 : vector<1x512xf32> to vector<8x512xf32>
    %10 = arith.addf %5, %9 : vector<8x512xf32>
    %11 = vector.extract_strided_slice %10 {offsets = [0, 0], sizes = [8, 256], strides = [1, 1]} : vector<8x512xf32> to vector<8x256xf32>
    %12 = vector.extract_strided_slice %10 {offsets = [0, 256], sizes = [8, 256], strides = [1, 1]} : vector<8x512xf32> to vector<8x256xf32>
    %cst_6 = arith.constant 0.000000e+00 : f32
    %13 = vector.broadcast %cst_6 : f32 to vector<8x256xf32>
    %14 = arith.subf %13, %11 : vector<8x256xf32>
    %15 = math.exp %14 : vector<8x256xf32>
    %cst_7 = arith.constant 1.000000e+00 : f32
    %16 = vector.broadcast %cst_7 : f32 to vector<8x256xf32>
    %17 = arith.addf %16, %15 : vector<8x256xf32>
    %18 = tpu.reciprocal %17 {approx = true} : vector<8x256xf32> -> vector<8x256xf32>
    %19 = arith.mulf %11, %18 : vector<8x256xf32>
    %20 = arith.mulf %19, %12 : vector<8x256xf32>
    %21 = arith.truncf %20 : vector<8x256xf32> to vector<8x256xbf16>
    %c0_8 = arith.constant 0 : index
    %c0_9 = arith.constant 0 : index
    %22 = vector.load %arg19[%c0_8, %c0_9] : memref<8x512xf32, #tpu.memory_space<vmem>>, vector<8x512xf32>
    %c0_10 = arith.constant 0 : index
    %c0_11 = arith.constant 0 : index
    %23 = vector.load %arg12[%c0_10, %c0_11] : memref<256x512xbf16, #tpu.memory_space<vmem>>, vector<256x512xbf16>
    %cst_12 = arith.constant dense<0.000000e+00> : vector<8x512xf32>
    %24 = tpu.matmul %21, %23, %cst_12 {dimension_numbers = #tpu.dot_dimension_numbers<[1], [0], [0], [1], [0, 0, 1, 1], [], []>} : vector<8x256xbf16>, vector<256x512xbf16>, vector<8x512xf32> -> vector<8x512xf32>
    %25 = arith.addf %22, %24 : vector<8x512xf32>
    %c0_13 = arith.constant 0 : index
    %c0_14 = arith.constant 0 : index
    %26 = vector.load %arg19[%c0_13, %c0_14] : memref<8x512xf32, #tpu.memory_space<vmem>>, vector<8x512xf32>
    tpu.vector_store %arg19[%c0_13, %c0_14], %25 {strides = array<i32>} : memref<8x512xf32, #tpu.memory_space<vmem>>, vector<8x512xf32>,
    %c1_i32 = arith.constant 1 : i32
    %27 = arith.cmpi eq, %arg1, %c1_i32 : i32
    %28 = arith.extui %27 : i1 to i32
    %c0_i32_15 = arith.constant 0 : i32
    %29 = arith.cmpi ne, %28, %c0_i32_15 : i32
    scf.if %29 {
      %c0_16 = arith.constant 0 : index
      %c0_17 = arith.constant 0 : index
      %30 = vector.load %arg19[%c0_16, %c0_17] : memref<8x512xf32, #tpu.memory_space<vmem>>, vector<8x512xf32>
      %c0_18 = arith.constant 0 : index
      %c0_19 = arith.constant 0 : index
      %31 = vector.load %arg13[%c0_18, %c0_19] : memref<1x512xf32, #tpu.memory_space<vmem>>, vector<1x512xf32>
      %32 = vector.shape_cast %31 : vector<1x512xf32> to vector<512xf32>
      %33 = vector.shape_cast %32 : vector<512xf32> to vector<1x512xf32>
      %34 = vector.broadcast %33 : vector<1x512xf32> to vector<8x512xf32>
      %35 = arith.addf %30, %34 : vector<8x512xf32>
      %36 = arith.truncf %35 : vector<8x512xf32> to vector<8x512xbf16>
      %c0_20 = arith.constant 0 : index
      %c0_21 = arith.constant 0 : index
      %37 = vector.load %arg14[%c0_20, %c0_21] : memref<512x128xbf16, #tpu.memory_space<vmem>>, vector<512x128xbf16>
      %cst_22 = arith.constant dense<0.000000e+00> : vector<8x128xf32>
      %38 = tpu.matmul %36, %37, %cst_22 {dimension_numbers = #tpu.dot_dimension_numbers<[1], [0], [0], [1], [0, 0, 1, 1], [], []>} : vector<8x512xbf16>, vector<512x128xbf16>, vector<8x128xf32> -> vector<8x128xf32>
      %c0_23 = arith.constant 0 : index
      %c0_24 = arith.constant 0 : index
      %39 = vector.load %arg15[%c0_23, %c0_24] : memref<1x128xf32, #tpu.memory_space<vmem>>, vector<1x128xf32>
      %40 = vector.shape_cast %39 : vector<1x128xf32> to vector<128xf32>
      %41 = vector.shape_cast %40 : vector<128xf32> to vector<1x128xf32>
      %42 = vector.broadcast %41 : vector<1x128xf32> to vector<8x128xf32>
      %43 = arith.addf %38, %42 : vector<8x128xf32>
      %c0_25 = arith.constant 0 : index
      %c0_26 = arith.constant 0 : index
      %44 = vector.load %arg17[%c0_25, %c0_26] : memref<8x128xf32, #tpu.memory_space<vmem>>, vector<8x128xf32>
      %45 = arith.addf %44, %43 : vector<8x128xf32>
      %c0_27 = arith.constant 0 : index
      %c0_28 = arith.constant 0 : index
      %c0_29 = arith.constant 0 : index
      %46 = vector.load %arg16[%c0_27, %c0_28, %c0_29] : memref<1x8x128xf32, #tpu.memory_space<vmem>>, vector<1x8x128xf32>
      %47 = vector.shape_cast %46 : vector<1x8x128xf32> to vector<8x128xf32>
      %48 = vector.shape_cast %45 : vector<8x128xf32> to vector<1x8x128xf32>
      tpu.vector_store %arg16[%c0_27, %c0_28, %c0_29], %48 {strides = array<i32>} : memref<1x8x128xf32, #tpu.memory_space<vmem>>, vector<1x8x128xf32>,
    } else {
    }
    return
  }
  func.func @transform_0(%arg0: i32, %arg1: i32) -> (i32, i32, i32) {
    %c0_i32 = arith.constant 0 : i32
    %c0_i32_0 = arith.constant 0 : i32
    %c0_i32_1 = arith.constant 0 : i32
    return %arg0, %c0_i32, %c0_i32_0 : i32, i32, i32
  }
  func.func @transform_1(%arg0: i32, %arg1: i32) -> (i32, i32) {
    %c0_i32 = arith.constant 0 : i32
    %c0_i32_0 = arith.constant 0 : i32
    %c0_i32_1 = arith.constant 0 : i32
    return %c0_i32, %c0_i32_0 : i32, i32
  }
  func.func @transform_2(%arg0: i32, %arg1: i32) -> (i32, i32) {
    %c0_i32 = arith.constant 0 : i32
    %c0_i32_0 = arith.constant 0 : i32
    %c0_i32_1 = arith.constant 0 : i32
    return %c0_i32, %c0_i32_0 : i32, i32
  }
  func.func @transform_3(%arg0: i32, %arg1: i32) -> (i32, i32) {
    %c0_i32 = arith.constant 0 : i32
    %c0_i32_0 = arith.constant 0 : i32
    %c0_i32_1 = arith.constant 0 : i32
    return %c0_i32, %c0_i32_0 : i32, i32
  }
  func.func @transform_4(%arg0: i32, %arg1: i32) -> (i32, i32) {
    %c0_i32 = arith.constant 0 : i32
    %c0_i32_0 = arith.constant 0 : i32
    %c0_i32_1 = arith.constant 0 : i32
    return %c0_i32, %c0_i32_0 : i32, i32
  }
  func.func @transform_5(%arg0: i32, %arg1: i32) -> (i32, i32) {
    %c0_i32 = arith.constant 0 : i32
    %c0_i32_0 = arith.constant 0 : i32
    %c0_i32_1 = arith.constant 0 : i32
    return %c0_i32, %c0_i32_0 : i32, i32
  }
  func.func @transform_6(%arg0: i32, %arg1: i32) -> (i32, i32) {
    %c0_i32 = arith.constant 0 : i32
    %c0_i32_0 = arith.constant 0 : i32
    %c0_i32_1 = arith.constant 0 : i32
    return %c0_i32, %c0_i32_0 : i32, i32
  }
  func.func @transform_7(%arg0: i32, %arg1: i32) -> (i32, i32) {
    %c0_i32 = arith.constant 0 : i32
    %c0_i32_0 = arith.constant 0 : i32
    %c0_i32_1 = arith.constant 0 : i32
    return %c0_i32, %c0_i32_0 : i32, i32
  }
  func.func @transform_8(%arg0: i32, %arg1: i32) -> (i32, i32) {
    %c0_i32 = arith.constant 0 : i32
    %c0_i32_0 = arith.constant 0 : i32
    return %c0_i32, %arg1 : i32, i32
  }
  func.func @transform_9(%arg0: i32, %arg1: i32) -> (i32, i32) {
    %c0_i32 = arith.constant 0 : i32
    %c0_i32_0 = arith.constant 0 : i32
    return %c0_i32, %arg1 : i32, i32
  }
  func.func @transform_10(%arg0: i32, %arg1: i32) -> (i32, i32) {
    %c0_i32 = arith.constant 0 : i32
    %c0_i32_0 = arith.constant 0 : i32
    return %arg1, %c0_i32 : i32, i32
  }
  func.func @transform_11(%arg0: i32, %arg1: i32) -> (i32, i32) {
    %c0_i32 = arith.constant 0 : i32
    %c0_i32_0 = arith.constant 0 : i32
    %c0_i32_1 = arith.constant 0 : i32
    return %c0_i32, %c0_i32_0 : i32, i32
  }
  func.func @transform_12(%arg0: i32, %arg1: i32) -> (i32, i32) {
    %c0_i32 = arith.constant 0 : i32
    %c0_i32_0 = arith.constant 0 : i32
    %c0_i32_1 = arith.constant 0 : i32
    return %c0_i32, %c0_i32_0 : i32, i32
  }
  func.func @transform_13(%arg0: i32, %arg1: i32) -> (i32, i32) {
    %c0_i32 = arith.constant 0 : i32
    %c0_i32_0 = arith.constant 0 : i32
    %c0_i32_1 = arith.constant 0 : i32
    return %c0_i32, %c0_i32_0 : i32, i32
  }
  func.func @transform_14(%arg0: i32, %arg1: i32) -> (i32, i32, i32) {
    %c0_i32 = arith.constant 0 : i32
    %c0_i32_0 = arith.constant 0 : i32
    %c0_i32_1 = arith.constant 0 : i32
    return %arg0, %c0_i32, %c0_i32_0 : i32, i32, i32
  }
}

</mosaic_0001>

<bundles_post_ra>
// kernel: tpu_custom_call.1
= control target key start
LH: loop header
LB: loop body
LE: loop exit
PB: predicated region body
PF: predicated region fallthrough
CT: control target
= control target key end

     0   :  { %s6315_s0 = inlined_call_operand.hbm [shape: f32[2,8,128], index: 0, kind: input, shape index: {}]   ;;  %s6316_s1 = inlined_call_operand.hbm [shape: f32[1,128], index: 1, kind: input, shape index: {}]   ;;  %s6317_s2 = inlined_call_operand.hbm [shape: bf16[128,384], index: 2, kind: input, shape index: {}]   ;;  %s6318_s3 = inlined_call_operand.hbm [shape: bf16[128,128], index: 3, kind: input, shape index: {}]   ;;  %s6319_s4 = inlined_call_operand.hbm [shape: f32[1,128], index: 4, kind: input, shape index: {}]   ;;  %s6320_s5 = inlined_call_operand.hbm [shape: f32[1,128], index: 5, kind: input, shape index: {}]   ;;  %s6321_s6 = inlined_call_operand.hbm [shape: bf16[128,512], index: 6, kind: input, shape index: {}]   ;;  %s6322_s7 = inlined_call_operand.vmem [shape: f32[1,512], index: 7, kind: input, shape index: {}]   ;;  %s6323_s8 = inlined_call_operand.hbm [shape: bf16[512,1024], index: 8, kind: input, shape index: {}]   ;;  %s6324_s9 = inlined_call_operand.vmem [shape: f32[1,1024], index: 9, kind: input, shape index: {}]   ;;  %s6325_s10 = inlined_call_operand.hbm [shape: bf16[512,512], index: 10, kind: input, shape index: {}]   ;;  %s6326_s11 = inlined_call_operand.vmem [shape: f32[1,512], index: 11, kind: input, shape index: {}]   ;;  %s6327_s12 = inlined_call_operand.hbm [shape: bf16[512,128], index: 12, kind: input, shape index: {}]   ;;  %s6328_s13 = inlined_call_operand.vmem [shape: f32[1,128], index: 13, kind: input, shape index: {}]   ;;  %s6329_s14 = inlined_call_operand.hbm [shape: f32[2,8,128], index: 14, kind: output, shape index: {}]  }
   0x1   :  { %6354 = sst [smem:[#allocation39_spill]] %s6315_s0 }
   0x2   :  { %6355 = sst [smem:[#allocation40_spill]] %s6316_s1 }
   0x3   :  { %6356 = sst [smem:[#allocation41_spill]] %s6317_s2 }
   0x4   :  { %6357 = sst [smem:[#allocation42_spill]] %s6318_s3 }
   0x5   :  { %6358 = sst [smem:[#allocation43_spill]] %s6319_s4 }
   0x6   :  { %6359 = sst [smem:[#allocation44_spill]] %s6320_s5 }
   0x7   :  { %6360 = sst [smem:[#allocation45_spill]] %s6321_s6 }
   0x8   :  { %6361 = sst [smem:[#allocation46_spill]] %s6322_s7 }
   0x9   :  { %6362 = sst [smem:[#allocation47_spill]] %s6323_s8 }
   0xa   :  { %6363 = sst [smem:[#allocation48_spill]] %s6324_s9 }
   0xb   :  { %6364 = sst [smem:[#allocation49_spill]] %s6326_s11 }
   0xc   :  { %6365 = sst [smem:[#allocation50_spill]] %s6327_s12 }
   0xd   :  { %6366 = sst [smem:[#allocation51_spill]] %s6328_s13 }
   0xe   :  { %6367 = sst [smem:[#allocation52_spill]] %s6329_s14 }
   0xf   :  { %19 = vsyncpa [#allocation6], 0 }
  0x10   :  { %21 = vsyncpa [#allocation6 + $0x1], 0 }
  0x11   :  { %22 = vsyncpa [#allocation9], 0 }
  0x12   :  { %23 = vsyncpa [#allocation12], 0 }
  0x13   :  { %24 = vsyncpa [#allocation15], 0 }
  0x14   :  { %25 = vsyncpa [#allocation18], 0 }
  0x15   :  { %27 = vsyncpa [#allocation18 + $0x1], 0 }
  0x16   :  { %28 = vsyncpa [#allocation21], 0 }
  0x17   :  { %29 = vsyncpa [#allocation7], 0 }
  0x18   :  { %31 = vsyncpa [#allocation7 + $0x1], 0  ;;  %s5589_s29 = smov 0   ;;  %s5591_s30 = smov 0  }
  0x19   :  { %s5593_s15 = smov 0   ;;  %s5595_s16 = smov 0  }
  0x1a   :  { %s5597_s17 = smov 0   ;;  %s5599_s18 = smov 0  }
  0x1b   :  { %s5601_s19 = smov 0   ;;  %s5603_s20 = smov 0  }
  0x1c   :  { %s5605_s21 = smov 0   ;;  %s5607_s22 = smov 0  }
  0x1d   :  { %s5609_s23 = smov 0  }
  0x1e LB: > { %6368 = sst [smem:[#allocation30_spill]] %s5468_s18  ;;  %s5645_s24 = sadd.s32 4294967295, %s5488_s23   ;;  %s5488_s23 = sphi %s5609_s23, %s37_s23   ;;  %s5484_s22 = sphi %s5607_s22, %s6433_s22   ;;  %s5480_s21 = sphi %s5605_s21, %s6440_s21   ;;  %s5476_s20 = sphi %s5603_s20, %s6431_s20   ;;  %s5472_s19 = sphi %s5601_s19, %s6439_s19   ;;  %s5468_s18 = sphi %s5599_s18, %s6430_s18   ;;  %s5464_s17 = sphi %s5597_s17, %s6438_s17   ;;  %s5460_s16 = sphi %s5595_s16, %s6437_s16   ;;  %s5456_s15 = sphi %s5593_s15, %s6436_s15   ;;  %s5452_s30 = sphi %s5591_s30, %s6435_s30   ;;  %s5448_s29 = sphi %s5589_s29, %s6434_s29  }
  0x1f   : > { %6369 = sst [smem:[#allocation31_spill]] %s5472_s19  ;;  %p3932_p0 = scmp.ge.s32.totalorder %s5488_s23, 1 }
  0x20   : > { %6370 = sst [smem:[#allocation32_spill]] %s5476_s20  ;;  %p6339_p1 = scmp.eq.s32.totalorder %s5645_s24, 0 }
  0x21   : > { %6371 = sst [smem:[#allocation33_spill]] %s5484_s22  ;;  %p394_p2 = scmp.lt.s32.totalorder %s5488_s23, 5 }
  0x22   : > { %s5490_s26 = smov [#allocation8]   ;;  %s5491_s28 = smov [#allocation11]  }
  0x23   : > { %p5650_p3 = pnand %p3932_p0, %p394_p2  ;;  %s407_s27 = sshll.u32 %s5490_s26, 4  ;;  %s408_s27 = int_to_ptr.vmem [resolvable:$true] %s407_s27 }
  0x24   : > { %s430_s14 = sshll.u32 %s5491_s28, 4  ;;  %s5492_s13 = smov [#allocation14]   ;;  %s5662_s14 = int_to_ptr.vmem [resolvable:$true] %s430_s14 }
  0x25   : > { %s6372_s25 = scalar_select %p5650_p3, 1, 0 }
  0x26   : > { %p4482_p4 = pneg %p5650_p3  ;;  %s455_s11 = sshll.u32 %s5492_s13, 4  ;;  %s456_s11 = int_to_ptr.vmem [resolvable:$true] %s455_s11 }
  0x27   : > { %6373 = sst [smem:[#allocation34_spill]] %s6372_s25  ;;  %s5093_s26 = scalar_lea.vmem %s408_s27, 16 }
  0x28   : > { %p5658_p5 = pnand %p4482_p4, %p6339_p1  ;;  %p5094_p7 = scmp.ne.s32.totalorder %s408_s27, %s5093_s26 }
  0x29   : > { %s5100_s28 = scalar_lea.vmem %s408_s27, 32  ;;  %p5101_p10 = scmp.lt.s32.totalorder %s408_s27, %s408_s27 }
  0x2a   : > { %p5666_p6 = pneg %p5658_p5  ;;  %p5102_p11 = scmp.lt.s32.totalorder %s5100_s28, %s5093_s26 }
  0x2c   : > { %p5096_p8 = pnand %p5094_p7, %p5666_p6  ;;  %p5103_p12 = por %p5102_p11, %p5101_p10 }
  0x2e   : > { %p5097_p9 = pneg %p5096_p8 }
  0x30   : > { %p5104_p13 = pnand %p5103_p12, %p5097_p9 }
  0x32   : > { %5107 = shalt.err (!%p5104_p13)
}
  0x33   : > { %s6376_s1 = sld [smem:[#allocation40_spill]]  ;;  %s5119_s19 = scalar_lea.vmem %s5662_s14, 1024 }
  0x34   : > { %p5120_p0 = scmp.ne.s32.totalorder %s5662_s14, %s5119_s19  ;;  %p5127_p7 = scmp.lt.s32.totalorder %s5662_s14, %s5662_s14 }
  0x35   : > { %p5128_p8 = scmp.lt.s32.totalorder %s5119_s19, %s5119_s19 }
  0x36   : > { %p5122_p2 = pnand %p5120_p0, %p5666_p6 }
  0x37   : > { %p5129_p9 = por %p5128_p8, %p5127_p7 }
  0x38   : > { %p5123_p4 = pneg %p5122_p2 }
  0x39   : > { %4485 = dma.hbm_to_vmem [thread:$0]  (!%p5658_p5), %s6376_s1, 16, %s408_s27, [#allocation9]  }
  0x3a   : > { %p5130_p10 = pnand %p5129_p9, %p5123_p4 }
  0x3c   : > { %5133 = shalt.err (!%p5130_p10)
}
  0x3d   : > { %s6333_s26 = smov 64   ;;  %s6334_s9 = smov 4  }
  0x3e   : > { %s6377_s3 = sld [smem:[#allocation42_spill]]  ;;  %s5145_s13 = scalar_lea.vmem %s456_s11, 16 }
  0x3f   : > { %p5146_p11 = scmp.ne.s32.totalorder %s456_s11, %s5145_s13  ;;  %s5152_s19 = scalar_lea.vmem %s456_s11, 32 }
  0x40   : > { %p5153_p0 = scmp.lt.s32.totalorder %s456_s11, %s456_s11  ;;  %p5154_p2 = scmp.lt.s32.totalorder %s5152_s19, %s5145_s13 }
  0x41   : > { %p5148_p12 = pnand %p5146_p11, %p5666_p6 }
  0x42   : > { %p5155_p4 = por %p5154_p2, %p5153_p0 }
  0x43   : > { %p5149_p13 = pneg %p5148_p12 }
  0x44   : > { %4491 = dma.hbm_to_vmem [thread:$0]  (!%p5658_p5), %s6377_s3, 1024, %s5662_s14, [#allocation12], %s6333_s26, %s6333_s26, %s6334_s9  }
  0x45   : > { %p5156_p7 = pnand %p5155_p4, %p5149_p13 }
  0x47   : > { %5159 = shalt.err (!%p5156_p7)
}
  0x48   : > { %s6378_s5 = sld [smem:[#allocation44_spill]]  ;;  %p6345_p8 = scmp.eq.s32.totalorder %s5488_s23, 0 }
  0x49   : > { %p236_p9 = scmp.ne.s32.totalorder %s5456_s15, %s5452_s30  ;;  %p242_p10 = scmp.ne.s32.totalorder %s5452_s30, %s5448_s29 }
  0x4a   : > { %p6338_p13 = scmp.lt.s32.totalorder %s5488_s23, 4  ;;  %s519_s25 = sand.u32 1, %s5488_s23  }
  0x4b   : > { %p238_p11 = por %p236_p9, %p6345_p8  ;;  %p5709_p12 = por %p242_p10, %p6339_p1 }
  0x4c   : > { %s6337_s27 = sand.u32 1, %s5456_s15   ;;  %s4275_s13 = sshll.u32 %s5480_s21, 8 }
  0x4d   : > { %s6379_s1 = scalar_select %p5709_p12, 1, 0 }
  0x4e   : > { %4497 = dma.hbm_to_vmem [thread:$0]  (!%p5658_p5), %s6378_s5, 16, %s456_s11, [#allocation15]  }
  0x4f   : > { %6380 = sst [smem:[#allocation35_spill]] %s6379_s1  ;;  %s3943_s28 = sshll.u32 %s6337_s27, 10 }
  0x50   : > { %s6381_s8 = sld [smem:[#allocation47_spill]]  ;;  %s523_s14 = scalar_lea.vmem [#allocation17], %s3943_s28 }
  0x51   : > { %s530_s29 = sshll.u32 %s523_s14, 4  ;;  %p5726_p0 = pnand %p6338_p13, %p238_p11  ;;  %s531_s29 = int_to_ptr.vmem [resolvable:$true] %s530_s29 }
  0x52   : > { %s5495_s3 = smov [#allocation10]   ;;  %s5730_s1 = scalar_lea.sflag [#allocation18], %s519_s25 }
  0x53   : > { %s6382_s9 = scalar_select %p5726_p0, 1, 0 }
  0x54   : > { %s417_s5 = sshll.u32 %s5495_s3, 4  ;;  %p6340_p2 = pneg %p5726_p0  ;;  %s418_s5 = int_to_ptr.vmem [resolvable:$true] %s417_s5 }
  0x55   : > { %s5173_s27 = scalar_lea.vmem %s531_s29, 16384  ;;  %s5496_s14 = smov [#allocation17]  }
  0x56   : > { %s5722_s26 = scalar_lea.hbm %s6381_s8, %s4275_s13  ;;  %p5174_p4 = scmp.ne.s32.totalorder %s531_s29, %s5173_s27 }
  0x57   : > { %s5178_s28 = sshll.u32 %s5496_s14, 4  ;;  %s5179_s28 = int_to_ptr.vmem [resolvable:$false] %s5178_s28 }
  0x58   : > { %p5176_p7 = pnand %p5174_p4, %p6340_p2  ;;  %s5180_s13 = scalar_lea.vmem %s5179_s28, 32768 }
  0x59   : > { %p5181_p10 = scmp.lt.s32.totalorder %s531_s29, %s5179_s28  ;;  %p5182_p11 = scmp.lt.s32.totalorder %s5180_s13, %s5173_s27 }
  0x5a   : > { %p5177_p9 = pneg %p5176_p7 }
  0x5b   : > { %p5183_p13 = por %p5182_p11, %p5181_p10 }
  0x5d   : > { %p5184_p1 = pnand %p5183_p13, %p5177_p9 }
  0x5f   : > { %5187 = shalt.err (!%p5184_p1)
}
  0x60   : > { %s5497_s3 = smov 512   ;;  %s6341_s25 = smov 256  }
  0x61   : > { %s6343_s19 = smov 16   ;;  %s5199_s11 = scalar_lea.vmem %s418_s5, 3072 }
  0x62   : > { %4510 = dma.hbm_to_vmem [thread:$0]  (!%p5726_p0), %s5722_s26, 16384, %s531_s29, %s5730_s1, %s5497_s3, %s6341_s25, %s6343_s19  }
  0x63   : > { %p5200_p4 = scmp.ne.s32.totalorder %s418_s5, %s5199_s11  ;;  %p5207_p10 = scmp.lt.s32.totalorder %s418_s5, %s418_s5 }
  0x64   : > { %p5208_p13 = scmp.lt.s32.totalorder %s5199_s11, %s5199_s11 }
  0x65   : > { %p5202_p7 = pnand %p5200_p4, %p5666_p6 }
  0x66   : > { %p5209_p1 = por %p5208_p13, %p5207_p10 }
  0x67   : > { %p5203_p2 = pneg %p5202_p7 }
  0x69   : > { %p5210_p9 = pnand %p5209_p1, %p5203_p2 }
  0x6b   : > { %5213 = shalt.err (!%p5210_p9)
}
  0x6c   : > { %s5500_s27 = smov 192   ;;  %s5501_s14 = smov 12  }
  0x6d   : > { %s6383_s2 = sld [smem:[#allocation41_spill]]  ;;  %s5502_s26 = smov [#allocation13]  }
  0x6e   : > { %s444_s29 = sshll.u32 %s5502_s26, 4  ;;  %s5503_s3 = smov [#allocation16]   ;;  %s445_s29 = int_to_ptr.vmem [resolvable:$true] %s444_s29 }
  0x6f   : > { %s465_s25 = sshll.u32 %s5503_s3, 4  ;;  %s5225_s19 = scalar_lea.vmem %s445_s29, 16  ;;  %s466_s25 = int_to_ptr.vmem [resolvable:$true] %s465_s25 }
  0x70   : > { %p5226_p11 = scmp.ne.s32.totalorder %s445_s29, %s5225_s19  ;;  %s5232_s11 = scalar_lea.vmem %s445_s29, 32 }
  0x71   : > { %p5233_p7 = scmp.lt.s32.totalorder %s445_s29, %s445_s29  ;;  %p5234_p10 = scmp.lt.s32.totalorder %s5232_s11, %s5225_s19 }
  0x72   : > { %p5228_p4 = pnand %p5226_p11, %p5666_p6 }
  0x73   : > { %4488 = dma.hbm_to_vmem [thread:$0]  (!%p5658_p5), %s6383_s2, 3072, %s418_s5, [#allocation9], %s5500_s27, %s5500_s27, %s5501_s14  }
  0x74   : > { %p5229_p2 = pneg %p5228_p4  ;;  %p5235_p13 = por %p5234_p10, %p5233_p7 }
  0x76   : > { %p5236_p1 = pnand %p5235_p13, %p5229_p2 }
  0x78   : > { %5239 = shalt.err (!%p5236_p1)
}
  0x79   : > { %s6384_s4 = sld [smem:[#allocation43_spill]]  ;;  %s5251_s27 = scalar_lea.vmem %s466_s25, 4096 }
  0x7a   : > { %p5252_p9 = scmp.ne.s32.totalorder %s466_s25, %s5251_s27  ;;  %p5259_p4 = scmp.lt.s32.totalorder %s466_s25, %s466_s25 }
  0x7b   : > { %p5260_p12 = scmp.lt.s32.totalorder %s5251_s27, %s5251_s27 }
  0x7c   : > { %p5254_p8 = pnand %p5252_p9, %p5666_p6 }
  0x7d   : > { %p5261_p3 = por %p5260_p12, %p5259_p4 }
  0x7e   : > { %p5255_p11 = pneg %p5254_p8 }
  0x7f   : > { %4494 = dma.hbm_to_vmem [thread:$0]  (!%p5658_p5), %s6384_s4, 16, %s445_s29, [#allocation12]  }
  0x80   : > { %p5262_p0 = pnand %p5261_p3, %p5255_p11 }
  0x82   : > { %5265 = shalt.err (!%p5262_p0)
}
  0x83   : > { %s6385_s19 = smov 16   ;;  %s6386_s14 = smov 256  }
  0x84   : > { %s6387_s6 = sld [smem:[#allocation45_spill]]  ;;  %s5504_s29 = smov [#allocation20]  }
  0x85   : > { %s484_s3 = sshll.u32 %s5504_s29, 4  ;;  %s485_s3 = int_to_ptr.vmem [resolvable:$true] %s484_s3 }
  0x86   : > { %s5277_s11 = scalar_lea.vmem %s485_s3, 4096  ;;  %p5285_p3 = scmp.lt.s32.totalorder %s485_s3, %s485_s3 }
  0x87   : > { %p5278_p8 = scmp.ne.s32.totalorder %s485_s3, %s5277_s11  ;;  %p5286_p0 = scmp.lt.s32.totalorder %s5277_s11, %s5277_s11 }
  0x89   : > { %p5280_p2 = pnand %p5278_p8, %p5666_p6  ;;  %p5287_p7 = por %p5286_p0, %p5285_p3 }
  0x8a   : > { %4500 = dma.hbm_to_vmem [thread:$0]  (!%p5658_p5), %s6387_s6, 4096, %s466_s25, [#allocation15], %s6386_s14, %s6386_s14, %s6385_s19  }
  0x8b   : > { %p5281_p12 = pneg %p5280_p2 }
  0x8d   : > { %p5288_p10 = pnand %p5287_p7, %p5281_p12 }
  0x8f   : > { %5291 = shalt.err (!%p5288_p10)
}
  0x90   : > { %s6388_s28 = smov 4   ;;  %s6389_s5 = smov 64  }
  0x91   : > { %s6390_s12 = sld [smem:[#allocation50_spill]]  ;;  %s3931_s7 = sadd.s32 4294967294, %s5488_s23  }
  0x92   : > { %s46_s20 = sadd.s32 1, %s5480_s21  ;;  %s49_s13 = sadd.s32 1, %s5484_s22 }
  0x93   : > { %p47_p6 = scmp.ge.s32.totalorder %s46_s20, 2  ;;  %s56_s26 = sadd.s32 1, %s5468_s18 }
  0x94   : > { %p63_p13 = scmp.ne.s32.totalorder %s5468_s18, %s5464_s17  ;;  %p69_p9 = scmp.ne.s32.totalorder %s5464_s17, %s5460_s16 }
  0x95   : > { %s6442_s20 = smov (%p47_p6, %s46_s20), 0  ;;  %s6444_s13 = smov (!%p47_p6, %s49_s13), %s5484_s22 }
  0x96   : > { %6391 = sst [smem:[#allocation36_spill]] %s6442_s20  ;;  %p51_p11 = scmp.ge.s32.totalorder %s6444_s13, 2 }
  0x97   : > { %4503 = dma.hbm_to_vmem [thread:$0]  (!%p5658_p5), %s6390_s12, 4096, %s485_s3, [#allocation21], %s6389_s5, %s6389_s5, %s6388_s28  }
  0x98   : > { %p6392_p5 = scmp.eq.s32.totalorder %s5488_s23, 0  ;;  %s226_s3 = ssub.s32 %s5480_s21, %s6442_s20 }
  0x99   : > { %p6394_p4 = scmp.eq.s32.totalorder %s5645_s24, 0  ;;  %p227_p2 = scmp.eq.s32.totalorder %s226_s3, 0 }
  0x9a   : > { %p5791_p1 = por %p6392_p5, %p63_p13  ;;  %s6446_s13 = smov (%p51_p11, %s6444_s13), 0 }
  0x9b   : > { %p5804_p8 = por %p6394_p4, %p69_p9  ;;  %6396 = sst [smem:[#allocation37_spill]] %s6446_s13 }
  0x9c   : > { %s6397_s28 = sadd.s32 1, %s5456_s15  ;;  %s53_s27 = ssub.s32 %s5484_s22, %s6446_s13 }
  0x9d   : > { %s5813_s5 = scalar_select %p227_p2, %s5456_s15, %s6397_s28  }
  0x9e   : > { %p381_p12 = scmp.eq.s32.totalorder %s5645_s24, 3  ;;  %p54_p3 = scmp.eq.s32.totalorder %s53_s27, 0 }
  0x9f   : > { %p387_p0 = scmp.eq.s32.totalorder %s3931_s7, 3  ;;  %s501_s2 = sand.u32 1, %s5468_s18  }
  0xa0   : > { %p5821_p7 = por %p381_p12, %p63_p13  ;;  %s3941_s28 = sshll.u32 %s501_s2, 3 }
  0xa1   : > { %s5827_s3 = scalar_select %p54_p3, %s5468_s18, %s56_s26  }
  0xa2   : > { %p5832_p10 = por %p387_p0, %p69_p9  ;;  %s3942_s6 = sshll.u32 %s5484_s22, 7 }
  0xa3   : > { %6399 = sst [smem:[#allocation38_spill]] %s5827_s3  ;;  %s505_s7 = scalar_lea.vmem [#allocation5], %s3941_s28 }
  0xa4   : > { %s6401_s0 = sld [smem:[#allocation39_spill]]  ;;  %s512_s13 = sshll.u32 %s505_s7, 4  ;;  %s513_s13 = int_to_ptr.vmem [resolvable:$true] %s512_s13 }
  0xa5   : > { %p6402_p6 = scmp.lt.s32.totalorder %s5488_s23, 4  ;;  %s6404_s26 = sand.u32 1, %s5456_s15  }
  0xa6   : > { %s3946_s3 = sshll.u32 %s6404_s26, 9  ;;  %s502_s18 = scalar_lea.sflag [#allocation6], %s501_s2 }
  0xa7   : > { %p5844_p13 = pnand %p6402_p6, %p5791_p1  ;;  %s5305_s22 = scalar_lea.vmem %s513_s13, 128 }
  0xa8   : > { %p5306_p9 = scmp.ne.s32.totalorder %s513_s13, %s5305_s22 }
  0xa9   : > { %p5294_p5 = pneg %p5844_p13 }
  0xaa   : > { %s510_s27 = scalar_lea.hbm %s6401_s0, %s3942_s6  ;;  %s5505_s6 = smov [#allocation5]  }
  0xab   : > { %p5308_p11 = pnand %p5306_p9, %p5294_p5  ;;  %s5310_s8 = sshll.u32 %s5505_s6, 4  ;;  %s5311_s8 = int_to_ptr.vmem [resolvable:$false] %s5310_s8 }
  0xac   : > { %s5312_s12 = scalar_lea.vmem %s5311_s8, 256  ;;  %p5313_p2 = scmp.lt.s32.totalorder %s513_s13, %s5311_s8 }
  0xad   : > { %p5309_p4 = pneg %p5308_p11  ;;  %p5314_p1 = scmp.lt.s32.totalorder %s5312_s12, %s5305_s22 }
  0xaf   : > { %p5315_p12 = por %p5314_p1, %p5313_p2 }
  0xb1   : > { %p5316_p3 = pnand %p5315_p12, %p5309_p4 }
  0xb3   : > { %5319 = shalt.err (!%p5316_p3)
}
  0xb4   : > { %4507 = dma.hbm_to_vmem [thread:$0]  (!%p5844_p13), %s510_s27, 128, %s513_s13, %s502_s18  }
  0xb5   : > { %s4277_s2 = sshll.u32 %s5480_s21, 13  ;;  %s552_s29 = scalar_lea.vmem [#allocation19], %s3946_s3 }
  0xb6   : > { %s560_s28 = sshll.u32 %s552_s29, 4  ;;  %s559_s0 = scalar_lea.hbm %s6325_s10, %s4277_s2  ;;  %s561_s28 = int_to_ptr.vmem [resolvable:$true] %s560_s28 }
  0xb7   : > { %s5333_s6 = scalar_lea.vmem %s561_s28, 8192  ;;  %p6405_p6 = scmp.ne.s32.totalorder %s6382_s9, 0 }
  0xb8   : > { %p5334_p0 = scmp.ne.s32.totalorder %s561_s28, %s5333_s6  ;;  %s5506_s22 = smov [#allocation19]  }
  0xb9   : > { %p6406_p5 = pneg %p6405_p6  ;;  %s5338_s8 = sshll.u32 %s5506_s22, 4  ;;  %s5339_s8 = int_to_ptr.vmem [resolvable:$false] %s5338_s8 }
  0xba   : > { %s5340_s20 = scalar_lea.vmem %s5339_s8, 16384  ;;  %p5341_p4 = scmp.lt.s32.totalorder %s561_s28, %s5339_s8 }
  0xbb   : > { %p5336_p9 = pnand %p5334_p0, %p6406_p5  ;;  %p5342_p13 = scmp.lt.s32.totalorder %s5340_s20, %s5333_s6 }
  0xbd   : > { %p5337_p11 = pneg %p5336_p9  ;;  %p5343_p2 = por %p5342_p13, %p5341_p4 }
  0xbf   : > { %p5344_p1 = pnand %p5343_p2, %p5337_p11 }
  0xc1   : > { %5347 = shalt.err (!%p5344_p1)
}
  0xc2   : > { %4513 = dma.hbm_to_vmem [thread:$0]  (!%p6405_p6), %s559_s0, 8192, %s561_s28, %s5730_s1, %s6386_s14, %s6386_s14, %s6385_s19  }
  0xc3   : > { %s6407_s18 = sld [smem:[#allocation34_spill]] }
  0xc9   : > { %p6408_p12 = scmp.ne.s32.totalorder %s6407_s18, 0 }
  0xca   : > { %s5870_s13 = sand.u32 (!%p6408_p12), 1, %s5464_s17  }
  0xcb   : > { %572 = sbr.rel (%p6408_p12) target bundleno = 3318 (0xcf6), region = 76  ;;  %s3951_s3 = sshll.u32 (!%p6408_p12), %s5870_s13, 3 }
  0xcc   : > { %s575_s27 = scalar_lea.sflag (!%p6408_p12), [#allocation6], %s5870_s13  ;;  %s578_s12 = scalar_lea.vmem (!%p6408_p12), [#allocation5], %s3951_s3 }
  0xd0   : > { %5419 = dma.done.wait (%p5804_p8), %s575_s27, 128  }
  0xd1   : > { %5421 = vsyncadd (%p5804_p8), %s575_s27, 4294967168  ;;  %p6409_p3 = scmp.eq.s32.totalorder %s5645_s24, 0 }
  0xd3   : > { %5423 = dma.done.wait (%p6409_p3), [#allocation9], 3088   ;;  %p6410_p0 = pmov %p6409_p3 }
  0xd5   : > { %5425 = vsyncadd (%p6410_p0), [#allocation9], 4294964208  ;;  %p6411_p6 = pmov %p6410_p0 }
  0xd6   : > { %p6412_p5 = pmov %p6410_p0 }
  0xd7   : > { %5427 = dma.done.wait (%p6411_p6), [#allocation12], 1040  }
  0xd8   : > { %5429 = vsyncadd (%p6412_p5), [#allocation12], 4294966256  ;;  %p6413_p9 = pmov %p6410_p0 }
  0xd9   : > { %p6414_p11 = pmov %p6410_p0 }
  0xda   : > { %5431 = dma.done.wait (%p6413_p9), [#allocation15], 4112  }
  0xdb   : > { %5433 = vsyncadd (%p6414_p11), [#allocation15], 4294963184  ;;  %s6415_s0 = sld [smem:[#allocation35_spill]]  ;;  %s607_s9 = sand.u32 1, %s5645_s24  }
  0xdc   : > { %s609_s1 = sand.u32 1, %s5452_s30   ;;  %s608_s14 = scalar_lea.sflag [#allocation18], %s607_s9 }
  0xdd   : > { %s3958_s19 = sshll.u32 %s609_s1, 10 }
  0xde   : > { %s5892_s11 = scalar_lea.vmem [#allocation17], %s3958_s19 }
  0xe1   : > { %p6416_p8 = scmp.ne.s32.totalorder %s6415_s0, 0 }
  0xe3   : > { %5435 = dma.done.wait (%p6416_p8), %s608_s14, 24576  }
  0xe4   : > { %5437 = vsyncadd (%p6416_p8), %s608_s14, 4294942720  ;;  %s3959_s2 = sshll.u32 %s609_s1, 9  ;;  %p6417_p4 = pmov %p6410_p0 }
  0xe5   : > { %s5898_s29 = scalar_lea.vmem [#allocation19], %s3959_s2 }
  0xe6   : > { %5439 = dma.done.wait (%p6417_p4), [#allocation21], 4096   ;;  %p6418_p13 = pmov %p6410_p0 }
  0xe7   : > { %s6419_s28 = sld [smem:[#allocation31_spill]]  ;;  %s5911_s20 = scalar_lea.vmem [#allocation22], %s3951_s3 }
  0xe8   : > { %5441 = vsyncadd (%p6418_p13), [#allocation21], 4294963200  ;;  %s6420_s22 = sld [smem:[#allocation48_spill]] }
  0xed   : > { %s3962_s7 = sshll.u32 %s6419_s28, 2  ;;  %p3963_p1 = scmp.ne.s32.totalorder %s6419_s28, 0 }
  0xee   : > { %p685_p2 = scmp.lt.s32.totalorder %s3962_s7, 7  ;;  %s5510_s24 = smov (!%p3963_p1), 96  }
  0xef   : > { %694 = sbr.rel (%p3963_p1) target bundleno = 2524 (0x9dc), region = 120  ;;  %s5511_s18 = smov (!%p3963_p1), 32  }
  0xf0   : > { %s6448_s7 = smov (!%p685_p2, %s3962_s7), 7  ;;  %s5512_s3 = smov (!%p3963_p1), 64  }
  0xf1   : > { %s687_s8 = scalar_lea.vmem %s6420_s22, %s6448_s7  ;;  %s6421_s0 = sld [smem:[#allocation46_spill]] (!%p3963_p1) }
  0xf4   : > { %v5914_v0 = vld [vmem:[%s578_s12] sm:$0xff]  ;;  %v5507_v3 = vmov 0.0   ;;  %v5508_v24 = vmov 0   ;;  %vm5509_vm0 = vmmov 0   ;;  %v3964_v32 = vld [vmem:[#allocation8] ss:$0 sm:$0xff] }
  0xf5   : > { %v697_v1 = vmul.f32 %v5914_v0, %v5914_v0  ;;  %v4642_v2 = vld [vmem:[#allocation10 + $0xac] ss:$12 sps:$4 sm:$0xff]   ;;  %4358 = vmatprep.subr.bf16.mxu1 %v5507_v3  ;;  %1864 = vst [vmem:[#allocation4 + $0x8] sm:$0xff] %v5507_v3  ;;  %1865 = vst [vmem:[#allocation4 + $0x10] sm:$0xff] %v5507_v3  ;;  %v4644_v4 = vld [vmem:[#allocation10 + $0xa8] ss:$12 sps:$4 sm:$0xff]   ;;  %905 = vmatprep.mubr.bf16.mxu0 %v5508_v24 }
  0xf6   : > { %1866 = vst [vmem:[#allocation4] sm:$0xff] %v5507_v3  ;;  %1867 = vst [vmem:[#allocation4 + $0x18] sm:$0xff] %v5507_v3  ;;  %v4645_v5 = vld [vmem:[#allocation10 + $0xb0] ss:$12 sps:$4 sm:$0xff]   ;;  %873 = vmatprep.subr.bf16.mxu0 %v4642_v2  ;;  %v4646_v6 = vld [vmem:[#allocation10 + $0x94] ss:$12 sps:$4 sm:$0xff]   ;;  %4374 = vmatprep.mubr.msk.bf16.mxu1 %vm5509_vm0, %v5507_v3 }
  0xf7   : > { %698 = vadd.xlane.f32.xlu0 %v697_v1  ;;  %v4648_v7 = vld [vmem:[#allocation10 + $0x90] ss:$12 sps:$4 sm:$0xff]   ;;  %874 = vmatpush1.bf16.msra.mxu0 %v4644_v4  ;;  %v4649_v8 = vld [vmem:[#allocation10 + $0x98] ss:$12 sps:$4 sm:$0xff]   ;;  %v4653_v11 = vld [vmem:[#allocation10 + $0x80] ss:$12 sps:$4 sm:$0xff]  }
  0xf8   : > { %4359 = vmatpush3.bf16.msra.mxu1 %v4645_v5  ;;  %875 = vmatprep.subr.bf16.mxu0 %v4646_v6  ;;  %v4650_v9 = vld [vmem:[#allocation10 + $0x7c] ss:$12 sps:$4 sm:$0xff]   ;;  %v4652_v10 = vld [vmem:[#allocation10 + $0x78] ss:$12 sps:$4 sm:$0xff]   ;;  %v4656_v13 = vld [vmem:[#allocation10 + $0x60] ss:$12 sps:$4 sm:$0xff]  }
  0xf9   : > { %4360 = vmatprep.subr.bf16.mxu1 %v5507_v3  ;;  %v4654_v12 = vld [vmem:[#allocation10 + $0x64] ss:$12 sps:$4 sm:$0xff]   ;;  %v4657_v14 = vld [vmem:[#allocation10 + $0x68] ss:$12 sps:$4 sm:$0xff]   ;;  %v4658_v15 = vld [vmem:[#allocation10 + $0x4c] ss:$12 sps:$4 sm:$0xff]  }
  0xfa   : > { %v4660_v16 = vld [vmem:[#allocation10 + $0x48] ss:$12 sps:$4 sm:$0xff]   ;;  %v4661_v17 = vld [vmem:[#allocation10 + $0x50] ss:$12 sps:$4 sm:$0xff]   ;;  %v4665_v20 = vld [vmem:[#allocation10 + $0x38] ss:$12 sps:$4 sm:$0xff]  }
  0xfb   : > { %876 = vmatpush1.bf16.msra.mxu0 %v4648_v7  ;;  %v4662_v18 = vld [vmem:[#allocation10 + $0x34] ss:$12 sps:$4 sm:$0xff]   ;;  %v4664_v19 = vld [vmem:[#allocation10 + $0x30] ss:$12 sps:$4 sm:$0xff]   ;;  %v4668_v22 = vld [vmem:[#allocation10 + $0x18] ss:$12 sps:$4 sm:$0xff]  }
  0xfc   : > { %4361 = vmatpush3.bf16.msra.mxu1 %v4649_v8  ;;  %877 = vmatprep.subr.bf16.mxu0 %v4650_v9  ;;  %v4666_v21 = vld [vmem:[#allocation10 + $0x1c] ss:$12 sps:$4 sm:$0xff]   ;;  %v4669_v23 = vld [vmem:[#allocation10 + $0x20] ss:$12 sps:$4 sm:$0xff]   ;;  %v4670_v25 = vld [vmem:[#allocation10 + $0x4] ss:$12 sps:$4 sm:$0xff]  }
  0xfd   : > { %4362 = vmatprep.subr.bf16.mxu1 %v5507_v3  ;;  %v4672_v26 = vld [vmem:[#allocation10] ss:$12 sps:$4 sm:$0xff]   ;;  %v4673_v27 = vld [vmem:[#allocation10 + $0x8] ss:$12 sps:$4 sm:$0xff]   ;;  %vm958_vm1 = vcmask 261120   ;;  %vm1021_vm2 = vcmask 1043456  }
  0xfe   : > { %vm1005_vm3 = vcmask 64512   ;;  %vm1414_vm4 = vcmask 523264   ;;  %vm1417_vm5 = vcmask 785408  }
  0xff   : > { %878 = vmatpush1.bf16.msra.mxu0 %v4652_v10 }
 0x100   : > { %4363 = vmatpush3.bf16.msra.mxu1 %v4653_v11  ;;  %879 = vmatprep.subr.bf16.mxu0 %v4654_v12 }
 0x101   : > { %4364 = vmatprep.subr.bf16.mxu1 %v5507_v3 }
 0x103   : > { %880 = vmatpush1.bf16.msra.mxu0 %v4656_v13 }
 0x104   : > { %4365 = vmatpush3.bf16.msra.mxu1 %v4657_v14  ;;  %881 = vmatprep.subr.bf16.mxu0 %v4658_v15 }
 0x105   : > { %4366 = vmatprep.subr.bf16.mxu1 %v5507_v3 }
 0x107   : > { %882 = vmatpush1.bf16.msra.mxu0 %v4660_v16 }
 0x108   : > { %4367 = vmatpush3.bf16.msra.mxu1 %v4661_v17  ;;  %883 = vmatprep.subr.bf16.mxu0 %v4662_v18 }
 0x109   : > { %4368 = vmatprep.subr.bf16.mxu1 %v5507_v3 }
 0x10b   : > { %884 = vmatpush1.bf16.msra.mxu0 %v4664_v19 }
 0x10c   : > { %4369 = vmatpush3.bf16.msra.mxu1 %v4665_v20  ;;  %885 = vmatprep.subr.bf16.mxu0 %v4666_v21 }
 0x10d   : > { %4370 = vmatprep.subr.bf16.mxu1 %v5507_v3 }
 0x10f   : > { %886 = vmatpush1.bf16.msra.mxu0 %v4668_v22 }
 0x110   : > { %4371 = vmatpush3.bf16.msra.mxu1 %v4669_v23  ;;  %887 = vmatprep.subr.bf16.mxu0 %v4670_v25 }
 0x111   : > { %4372 = vmatprep.subr.bf16.mxu1 %v5507_v3 }
 0x113   : > { %888 = vmatpush1.bf16.msra.mxu0 %v4672_v26 }
 0x114   : > { %4373 = vmatpush3.bf16.msra.mxu1 %v4673_v27  ;;  %4402 = vmatprep.subr.bf16.mxu0 %v5507_v3 }
 0x115   : > { %4378 = vmatprep.subr.bf16.mxu1 %v5507_v3 }
 0x180   : > { %v699_v28 = vpop.xlane.xlu0 %698 }
 0x181   : > { %v701_v29 = vmul.f32 0.0078125, %v699_v28 }
 0x183   : > { %v702_v30 = vadd.f32 1.1920929e-07, %v701_v29 }
 0x185   : > { %4730 = vrsqrt.f32 %v702_v30 }
 0x192   : > { %v4731_v31 = vpop.eup %4730 }
 0x193   : > { %v704_v33 = vmul.f32 %v4731_v31, %v5914_v0 }
 0x195   : > { %v711_v34 = vmul.f32 %v3964_v32, %v704_v33 }
 0x197   : > { %v712_v35 = vpack.c.bf16 %v711_v34, %v711_v34 }
 0x199   : > { %906 = vmatmul.mubr.bf16.vlgmr.msra.gmra.mxu0 %v712_v35  ;;  %4375 = vmatmul.mubr.bf16.vlgmr.msra.gmra.mxu1 %v712_v35 }
 0x19a   : > { %4380 = vmatprep.mubr.msk.bf16.mxu1 %vm5509_vm0, %v5507_v3  ;;  %4404 = vmatprep.mubr.msk.bf16.mxu0 %vm5509_vm0, %v5507_v3 }
 0x259   : > { %v907_v36 = vpop.f32.mrf.mxu0  ;;  %v948_v37 = vpop.f32.mrf.mxu1 }
 0x25a   : > { %v954_v46 = vmul.f32 0.17677669, %v907_v36  ;;  %v5942_v47 = vpack.c.bf16 %v948_v37, %v948_v37 }
 0x25b   : > { %v909_v38 = vpop.f32.mrf.mxu0  ;;  %v4376_v39 = vpop.f32.mrf.mxu1 }
 0x25c   : > { %v956_v40 = vpack.c.bf16 %v909_v38, %v909_v38  ;;  %v955_v48 = vpack.c.bf16 %v954_v46, %v954_v46  ;;  %v1023_v49 = vsel %vm1021_vm2, %v5942_v47, 0 }
 0x25d   : > { %v911_v41 = vpop.f32.mrf.mxu0  ;;  %v951_v42 = vpop.f32.mrf.mxu1 }
 0x25e   : > { %v963_v43 = vsel %vm958_vm1, %v956_v40, 0 }
 0x25f   : > { %v912_v44 = vpop.f32.mrf.mxu0  ;;  %v4377_v45 = vpop.f32.mrf.mxu1  ;;  %4379 = vmatpush3.bf16.xpose.msra.mxu1 %v963_v43 }
 0x260   : > { %4384 = vmatprep.subr.bf16.mxu1 %v5507_v3 }
 0x266   : > { %4381 = vmatmul.mubr.msk.bf16.vlgmr.msra.gmra.mxu1 %vm958_vm1, %v955_v48 }
 0x267   : > { %4385 = vmatpush3.bf16.msra.mxu1 %v1023_v49  ;;  %4386 = vmatprep.mubr.msk.bf16.mxu1 %vm5509_vm0, %v5507_v3 }
 0x268   : > { %4390 = vmatprep.subr.bf16.mxu1 %v5507_v3 }
 0x326   : > { %v999_v50 = vpop.f32.mrf.mxu1 }
 0x327   : > { %v1006_v51 = vsel %vm1005_vm3, %v999_v50, -inf }
 0x328   : > { %1007 = vmax.xlane.f32.xlu0 %v1006_v51  ;;  %v4382_v52 = vpop.f32.mrf.mxu1 }
 0x32a   : > { %v1002_v53 = vpop.f32.mrf.mxu1 }
 0x32c   : > { %v4383_v54 = vpop.f32.mrf.mxu1 }
 0x33e   : > { %1067 = vrot.lane.b32.xlu0 %v955_v48, %s5510_s24 }
 0x342   : > { %1291 = vrot.lane.b32.xlu0 %v955_v48, %s5511_s18 }
 0x3b1   : > { %v1008_v55 = vpop.xlane.xlu0 %1007 }
 0x3b2   : > { %v1009_v56 = vsub.f32 %v999_v50, %v1008_v55 }
 0x3b4   : > { %v1010_v57 = vmul.f32 1.442695, %v1009_v56 }
 0x3b5   : > { %v1068_v8 = vpop.permute.xlu0 %1067 }
 0x3b6   : > { %4732 = vpow2.f32 %v1010_v57 }
 0x3b9   : > { %v1292_v10 = vpop.permute.xlu0 %1291 }
 0x3c3   : > { %v4733_v58 = vpop.eup %4732 }
 0x3c4   : > { %v1012_v59 = vsel %vm1005_vm3, %v4733_v58, 0.0 }
 0x3c5   : > { %1013 = vadd.xlane.f32.xlu1 %v1012_v59 }
 0x3d6   : > { %1070 = vrot.lane.b32.xlu1 %v956_v40, %s5510_s24 }
 0x3da   : > { %1182 = vrot.lane.b32.xlu1 %v956_v40, %s5512_s3 }
 0x3de   : > { %1180 = vrot.lane.b32.xlu1 %v955_v48, %s5512_s3 }
 0x3e2   : > { %1293 = vrot.lane.b32.xlu1 %v956_v40, %s5511_s18 }
 0x44e   : > { %v1014_v60 = vpop.xlane.xlu1 %1013 }
 0x44f   : > { %4734 = vrcp.f32 %v1014_v60 }
 0x452   : > { %v1071_v61 = vpop.permute.xlu1 %1070 }
 0x453   : > { %v1076_v9 = vsel %vm958_vm1, %v1071_v61, 0 }
 0x456   : > { %v1183_v62 = vpop.permute.xlu1 %1182 }
 0x457   : > { %v1188_v63 = vsel %vm958_vm1, %v1183_v62, 0 }
 0x458   : > { %4403 = vmatpush3.bf16.xpose.msra.mxu0 %v1188_v63 }
 0x459   : > { %4414 = vmatprep.subr.bf16.mxu0 %v5507_v3 }
 0x45a   : > { %v1181_v1 = vpop.permute.xlu1 %1180 }
 0x45c   : > { %v4735_v2 = vpop.eup %4734 }
 0x45d   : > { %v1016_v4 = vmul.f32 %v4735_v2, %v4733_v58  ;;  %v4675_v2 = vld [vmem:[#allocation11 + $0x30] sm:$0xff]  }
 0x45e   : > { %v1294_v5 = vpop.permute.xlu1 %1293 }
 0x45f   : > { %v1299_v6 = vsel %vm958_vm1, %v1294_v5, 0  ;;  %4405 = vmatmul.mubr.msk.bf16.vlgmr.msra.gmra.mxu0 %vm958_vm1, %v1181_v1  ;;  %v1017_v7 = vpack.c.bf16 %v1016_v4, %v1016_v4  ;;  %v4674_v1 = vld [vmem:[#allocation11 + $0x38] sm:$0xff]   ;;  %v4676_v4 = vld [vmem:[#allocation11 + $0x28] sm:$0xff]   ;;  %v4677_v5 = vld [vmem:[#allocation11 + $0x20] sm:$0xff]  }
 0x460   : > { %4415 = vmatpush3.bf16.xpose.msra.mxu0 %v1299_v6  ;;  %4416 = vmatprep.mubr.msk.bf16.mxu0 %vm5509_vm0, %v5507_v3  ;;  %v4678_v6 = vld [vmem:[#allocation11 + $0x18] sm:$0xff]  }
 0x461   : > { %4387 = vmatmul.mubr.msk.bf16.vlgmr.msra.gmra.mxu1 %vm1005_vm3, %v1017_v7  ;;  %4426 = vmatprep.subr.bf16.mxu0 %v5507_v3  ;;  %v4679_v7 = vld [vmem:[#allocation11 + $0x10] sm:$0xff]  }
 0x462   : > { %4391 = vmatpush3.bf16.xpose.msra.mxu1 %v1076_v9  ;;  %4392 = vmatprep.mubr.msk.bf16.mxu1 %vm5509_vm0, %v5507_v3 }
 0x463   : > { %4396 = vmatprep.subr.bf16.mxu1 %v5507_v3 }
 0x467   : > { %4417 = vmatmul.mubr.msk.bf16.vlgmr.msra.gmra.mxu0 %vm958_vm1, %v1292_v10  ;;  %v4681_v10 = vld [vmem:[#allocation11] sm:$0xff]  }
 0x468   : > { %4442 = vmatprep.mubr.msk.bf16.mxu0 %vm5509_vm0, %v5507_v3  ;;  %4427 = vmatpush3.bf16.msra.mxu0 %v4674_v1  ;;  %v4718_v1 = vld [vmem:[#allocation16 + $0x20] ss:$16 sps:$4 sm:$0xff]  }
 0x469   : > { %4393 = vmatmul.mubr.msk.bf16.vlgmr.msra.gmra.mxu1 %vm958_vm1, %v1068_v8  ;;  %4428 = vmatprep.subr.bf16.mxu0 %v5507_v3  ;;  %v4680_v8 = vld [vmem:[#allocation11 + $0x8] sm:$0xff]  }
 0x46a   : > { %4398 = vmatprep.mubr.msk.bf16.mxu1 %vm5509_vm0, %v5507_v3 }
 0x46c   : > { %4429 = vmatpush3.bf16.msra.mxu0 %v4675_v2  ;;  %v4721_v2 = vld [vmem:[#allocation16 + $0x28] ss:$16 sps:$4 sm:$0xff]  }
 0x46d   : > { %4430 = vmatprep.subr.bf16.mxu0 %v5507_v3 }
 0x470   : > { %4431 = vmatpush3.bf16.msra.mxu0 %v4676_v4  ;;  %v4726_v4 = vld [vmem:[#allocation16 + $0x4] ss:$16 sps:$4 sm:$0xff]  }
 0x471   : > { %4432 = vmatprep.subr.bf16.mxu0 %v5507_v3 }
 0x474   : > { %4433 = vmatpush3.bf16.msra.mxu0 %v4677_v5  ;;  %v4729_v5 = vld [vmem:[#allocation16 + $0xc] ss:$16 sps:$4 sm:$0xff]  }
 0x475   : > { %4434 = vmatprep.subr.bf16.mxu0 %v5507_v3 }
 0x478   : > { %4435 = vmatpush3.bf16.msra.mxu0 %v4678_v6  ;;  %v4724_v6 = vld [vmem:[#allocation16] ss:$16 sps:$4 sm:$0xff]  }
 0x479   : > { %4436 = vmatprep.subr.bf16.mxu0 %v5507_v3 }
 0x47c   : > { %4437 = vmatpush3.bf16.msra.mxu0 %v4679_v7  ;;  %v4727_v7 = vld [vmem:[#allocation16 + $0x8] ss:$16 sps:$4 sm:$0xff]  }
 0x47d   : > { %4438 = vmatprep.subr.bf16.mxu0 %v5507_v3 }
 0x480   : > { %4439 = vmatpush3.bf16.msra.mxu0 %v4680_v8 }
 0x481   : > { %4440 = vmatprep.subr.bf16.mxu0 %v5507_v3 }
 0x484   : > { %4441 = vmatpush3.bf16.msra.mxu0 %v4681_v10 }
 0x51f   : > { %v1224_v11 = vpop.f32.mrf.mxu0 }
 0x520   : > { %v1230_v12 = vsel %vm1005_vm3, %v1224_v11, -inf }
 0x521   : > { %v5977_v13 = vpop.f32.mrf.mxu1  ;;  %1231 = vmax.xlane.f32.xlu0 %v1230_v12  ;;  %v4406_v14 = vpop.f32.mrf.mxu0 }
 0x523   : > { %v4388_v15 = vpop.f32.mrf.mxu1  ;;  %v1227_v16 = vpop.f32.mrf.mxu0 }
 0x525   : > { %v1062_v17 = vpop.f32.mrf.mxu1  ;;  %v4407_v18 = vpop.f32.mrf.mxu0 }
 0x527   : > { %v4389_v19 = vpop.f32.mrf.mxu1  ;;  %v1335_v20 = vpop.f32.mrf.mxu0 }
 0x528   : > { %v1341_v21 = vsel %vm1005_vm3, %v1335_v20, -inf }
 0x529   : > { %v1112_v22 = vpop.f32.mrf.mxu1  ;;  %1342 = vmax.xlane.f32.xlu0 %v1341_v21  ;;  %v4418_v23 = vpop.f32.mrf.mxu0 }
 0x52a   : > { %v1118_v25 = vsel %vm1005_vm3, %v1112_v22, -inf }
 0x52b   : > { %1119 = vmax.xlane.f32.xlu1 %v1118_v25  ;;  %v4394_v26 = vpop.f32.mrf.mxu1  ;;  %v1338_v27 = vpop.f32.mrf.mxu0 }
 0x52c   : > { %v1065_v27 = vpack.c.bf16 %v5977_v13, %v5977_v13  ;;  %v4688_v13 = vld [vmem:[#allocation16 + $0xc0] ss:$16 sps:$4 sm:$0xff]  }
 0x52d   : > { %v1115_v28 = vpop.f32.mrf.mxu1  ;;  %v4419_v29 = vpop.f32.mrf.mxu0 }
 0x52f   : > { %v4395_v30 = vpop.f32.mrf.mxu1 }
 0x5aa   : > { %v1232_v31 = vpop.xlane.xlu0 %1231 }
 0x5ab   : > { %v1233_v32 = vsub.f32 %v1224_v11, %v1232_v31 }
 0x5ad   : > { %v1234_v33 = vmul.f32 1.442695, %v1233_v32 }
 0x5af   : > { %4736 = vpow2.f32 %v1234_v33  ;;  %v4682_v33 = vld [vmem:[#allocation16 + $0xe0] ss:$16 sps:$4 sm:$0xff]  }
 0x5b2   : > { %v1343_v34 = vpop.xlane.xlu0 %1342 }
 0x5b3   : > { %v1344_v35 = vsub.f32 %v1335_v20, %v1343_v34  ;;  %v4684_v34 = vld [vmem:[#allocation16 + $0xe4] ss:$16 sps:$4 sm:$0xff]  }
 0x5b4   : > { %v1120_v36 = vpop.xlane.xlu1 %1119 }
 0x5b5   : > { %v1121_v37 = vsub.f32 %v1112_v22, %v1120_v36  ;;  %v1345_v38 = vmul.f32 1.442695, %v1344_v35  ;;  %v4685_v35 = vld [vmem:[#allocation16 + $0xe8] ss:$16 sps:$4 sm:$0xff]   ;;  %v4687_v36 = vld [vmem:[#allocation16 + $0xec] ss:$16 sps:$4 sm:$0xff]  }
 0x5b6   : > { %1805 = vmatprep.subr.bf16.mxu0 %v4687_v36 }
 0x5b7   : > { %v1122_v39 = vmul.f32 1.442695, %v1121_v37  ;;  %v4690_v37 = vld [vmem:[#allocation16 + $0xc4] ss:$16 sps:$4 sm:$0xff]  }
 0x5b9   : > { %4738 = vpow2.f32 %v1122_v39  ;;  %v4691_v39 = vld [vmem:[#allocation16 + $0xc8] ss:$16 sps:$4 sm:$0xff]  }
 0x5ba   : > { %4740 = vpow2.f32 %v1345_v38  ;;  %v4693_v38 = vld [vmem:[#allocation16 + $0xcc] ss:$16 sps:$4 sm:$0xff]  }
 0x5bc   : > { %v4737_v40 = vpop.eup %4736 }
 0x5bd   : > { %v1236_v41 = vsel %vm1005_vm3, %v4737_v40, 0.0 }
 0x5be   : > { %1237 = vadd.xlane.f32.xlu1 %v1236_v41 }
 0x5c6   : > { %v4739_v42 = vpop.eup %4738 }
 0x5c7   : > { %v1124_v43 = vsel %vm1005_vm3, %v4739_v42, 0.0  ;;  %v4741_v44 = vpop.eup %4740 }
 0x5c8   : > { %1125 = vadd.xlane.f32.xlu0 %v1124_v43  ;;  %v1347_v45 = vsel %vm1005_vm3, %v4741_v44, 0.0 }
 0x5cc   : > { %1348 = vadd.xlane.f32.xlu0 %v1347_v45 }
 0x5cf   : > { %1131 = vrot.lane.b32.xlu1 %v5942_v47, %s5510_s24 }
 0x5d3   : > { %1353 = vrot.lane.b32.xlu1 %v5942_v47, %s5511_s18 }
 0x5e2   : > { %1242 = vrot.lane.b32.xlu0 %v5942_v47, %s5512_s3 }
 0x647   : > { %v1238_v46 = vpop.xlane.xlu1 %1237 }
 0x64b   : > { %v1132_v48 = vpop.permute.xlu1 %1131 }
 0x64c   : > { %v1137_v49 = vsel %vm1021_vm2, %v1132_v48, 0  ;;  %v4696_v48 = vld [vmem:[#allocation16 + $0xa4] ss:$16 sps:$4 sm:$0xff]  }
 0x64d   : > { %4397 = vmatpush3.bf16.msra.mxu1 %v1137_v49  ;;  %v4699_v49 = vld [vmem:[#allocation16 + $0xac] ss:$16 sps:$4 sm:$0xff]  }
 0x64e   : > { %4408 = vmatprep.subr.bf16.mxu1 %v5507_v3 }
 0x64f   : > { %v1354_v58 = vpop.permute.xlu1 %1353 }
 0x650   : > { %v1359_v61 = vsel %vm1021_vm2, %v1354_v58, 0  ;;  %v4714_v58 = vld [vmem:[#allocation16 + $0x44] ss:$16 sps:$4 sm:$0xff]  }
 0x651   : > { %v1126_v50 = vpop.xlane.xlu0 %1125 }
 0x652   : > { %4742 = vrcp.f32 %v1126_v50  ;;  %v4694_v50 = vld [vmem:[#allocation16 + $0xa0] ss:$16 sps:$4 sm:$0xff]  }
 0x653   : > { %4744 = vrcp.f32 %v1238_v46 }
 0x655   : > { %v1349_v51 = vpop.xlane.xlu0 %1348 }
 0x656   : > { %4746 = vrcp.f32 %v1349_v51  ;;  %v4697_v51 = vld [vmem:[#allocation16 + $0xa8] ss:$16 sps:$4 sm:$0xff]  }
 0x659   : > { %v1243_v54 = vpop.permute.xlu0 %1242 }
 0x65a   : > { %v1248_v57 = vsel %vm1021_vm2, %v1243_v54, 0  ;;  %v4700_v54 = vld [vmem:[#allocation16 + $0x80] ss:$16 sps:$4 sm:$0xff]  }
 0x65f   : > { %v4743_v52 = vpop.eup %4742 }
 0x660   : > { %v1128_v53 = vmul.f32 %v4743_v52, %v4739_v42  ;;  %v4745_v56 = vpop.eup %4744  ;;  %v4702_v52 = vld [vmem:[#allocation16 + $0x84] ss:$16 sps:$4 sm:$0xff]  }
 0x661   : > { %v1240_v47 = vmul.f32 %v4745_v56, %v4737_v40  ;;  %v3997_v40 = vld [vmem:[#allocation13] ss:$0 sm:$0xff] }
 0x662   : > { %v1129_v55 = vpack.c.bf16 %v1128_v53, %v1128_v53  ;;  %v4705_v53 = vld [vmem:[#allocation16 + $0x8c] ss:$16 sps:$4 sm:$0xff]  }
 0x663   : > { %v1241_v59 = vpack.c.bf16 %v1240_v47, %v1240_v47  ;;  %v4747_v60 = vpop.eup %4746  ;;  %v4711_v56 = vld [vmem:[#allocation16 + $0x6c] ss:$16 sps:$4 sm:$0xff]   ;;  %v4709_v47 = vld [vmem:[#allocation16 + $0x68] ss:$16 sps:$4 sm:$0xff]  }
 0x664   : > { %4399 = vmatmul.mubr.msk.bf16.vlgmr.msra.gmra.mxu1 %vm1005_vm3, %v1129_v55  ;;  %v1351_v62 = vmul.f32 %v4747_v60, %v4741_v44  ;;  %v4703_v55 = vld [vmem:[#allocation16 + $0x88] ss:$16 sps:$4 sm:$0xff]   ;;  %v4712_v60 = vld [vmem:[#allocation16 + $0x40] ss:$16 sps:$4 sm:$0xff]  }
 0x665   : > { %4409 = vmatpush3.bf16.msra.mxu1 %v1248_v57  ;;  %4410 = vmatprep.mubr.msk.bf16.mxu1 %vm5509_vm0, %v5507_v3  ;;  %v4706_v57 = vld [vmem:[#allocation16 + $0x60] ss:$16 sps:$4 sm:$0xff]  }
 0x666   : > { %4420 = vmatprep.subr.bf16.mxu1 %v5507_v3  ;;  %v1352_v63 = vpack.c.bf16 %v1351_v62, %v1351_v62  ;;  %v4720_v62 = vld [vmem:[#allocation16 + $0x24] ss:$16 sps:$4 sm:$0xff]  }
 0x66c   : > { %4411 = vmatmul.mubr.msk.bf16.vlgmr.msra.gmra.mxu1 %vm1005_vm3, %v1241_v59  ;;  %v4717_v59 = vld [vmem:[#allocation16 + $0x4c] ss:$16 sps:$4 sm:$0xff]  }
 0x66d   : > { %4421 = vmatpush3.bf16.msra.mxu1 %v1359_v61  ;;  %4422 = vmatprep.mubr.msk.bf16.mxu1 %vm5509_vm0, %v5507_v3  ;;  %v4715_v61 = vld [vmem:[#allocation16 + $0x48] ss:$16 sps:$4 sm:$0xff]  }
 0x66e   : > { %1764 = vmatprep.subr.bf16.mxu1 %v4684_v34 }
 0x674   : > { %4423 = vmatmul.mubr.msk.bf16.vlgmr.msra.gmra.mxu1 %vm1005_vm3, %v1352_v63  ;;  %v4723_v63 = vld [vmem:[#allocation16 + $0x2c] ss:$16 sps:$4 sm:$0xff]  }
 0x675   : > { %1796 = vmatprep.mubr.bf16.mxu1 %v5508_v24  ;;  %1765 = vmatpush1.bf16.msra.mxu1 %v4682_v33 }
 0x676   : > { %1766 = vmatprep.subr.bf16.mxu1 %v4690_v37 }
 0x679   : > { %1767 = vmatpush1.bf16.msra.mxu1 %v4688_v13 }
 0x67a   : > { %1768 = vmatprep.subr.bf16.mxu1 %v4696_v48 }
 0x67d   : > { %1769 = vmatpush1.bf16.msra.mxu1 %v4694_v50 }
 0x67e   : > { %1770 = vmatprep.subr.bf16.mxu1 %v4702_v52 }
 0x681   : > { %1771 = vmatpush1.bf16.msra.mxu1 %v4700_v54 }
 0x724   : > { %v1173_v9 = vpop.f32.mrf.mxu1 }
 0x725   : > { %v1179_v11 = vpack.c.bf16 %v1173_v9, %v1173_v9 }
 0x726   : > { %v4400_v12 = vpop.f32.mrf.mxu1 }
 0x727   : > { %1403 = vrot.lane.b32.xlu1 %v1179_v11, %s5511_s18  ;;  %v4006_v12 = vld [vmem:[#allocation14] ss:$0 sm:$0xff] }
 0x728   : > { %v1176_v14 = vpop.f32.mrf.mxu1 }
 0x72a   : > { %v4401_v15 = vpop.f32.mrf.mxu1 }
 0x72c   : > { %v1284_v16 = vpop.f32.mrf.mxu1 }
 0x72d   : > { %v1290_v17 = vpack.c.bf16 %v1284_v16, %v1284_v16 }
 0x72e   : > { %v4412_v18 = vpop.f32.mrf.mxu1 }
 0x72f   : > { %1406 = vrot.lane.b32.xlu1 %v1290_v17, %s5512_s3  ;;  %v1584_v17 = vlaneseq }
 0x730   : > { %v1287_v19 = vpop.f32.mrf.mxu1 }
 0x731   : > { %v1585_v18 = vshrl.u32 %v1584_v17, 7 }
 0x732   : > { %v4413_v20 = vpop.f32.mrf.mxu1 }
 0x733   : > { %v1586_v19 = vsub.s32 0, %v1585_v18  ;;  %v1594_v20 = vsub.s32 2, %v1585_v18 }
 0x734   : > { %v1395_v21 = vpop.f32.mrf.mxu1 }
 0x735   : > { %v1401_v22 = vpack.c.bf16 %v1395_v21, %v1395_v21  ;;  %v1590_v21 = vsub.s32 1, %v1585_v18 }
 0x736   : > { %v4424_v23 = vpop.f32.mrf.mxu1 }
 0x737   : > { %1409 = vrot.lane.b32.xlu0 %v1401_v22, %s5510_s24  ;;  %v1598_v22 = vsub.s32 3, %v1585_v18  ;;  %v1582_v23 = vld [vmem:[%s6421_s0] sm:$0xf] }
 0x738   : > { %v1398_v25 = vpop.f32.mrf.mxu1 }
 0x739   : > { %v1587_v25 = vrot.slane %v1582_v23, %v1586_v19 }
 0x73a   : > { %v4425_v3 = vpop.f32.mrf.mxu1 }
 0x73b   : > { %v1595_v3 = vrot.slane %v1582_v23, %v1594_v20 }
 0x799   : > { %v1404_v26 = vpop.permute.xlu1 %1403 }
 0x79a   : > { %v1413_v29 = vsel %vm958_vm1, %v1065_v27, %v1404_v26  ;;  %v1591_v26 = vrot.slane %v1582_v23, %v1590_v21  ;;  %v1599_v27 = vrot.slane %v1582_v23, %v1598_v22 }
 0x7a1   : > { %v1407_v28 = vpop.permute.xlu1 %1406 }
 0x7a2   : > { %v1416_v30 = vsel %vm1414_vm4, %v1413_v29, %v1407_v28 }
 0x7a9   : > { %v1410_v31 = vpop.permute.xlu0 %1409 }
 0x7aa   : > { %v1419_v32 = vsel %vm1417_vm5, %v1416_v30, %v1410_v31 }
 0x7ab   : > { %4443 = vmatmul.mubr.bf16.vlgmr.msra.gmra.mxu0 %v1419_v32 }
 0x7ac   : > { %1837 = vmatprep.mubr.bf16.mxu0 %v5508_v24  ;;  %1806 = vmatpush1.bf16.msra.mxu0 %v4685_v35 }
 0x7ad   : > { %1807 = vmatprep.subr.bf16.mxu0 %v4693_v38 }
 0x7b0   : > { %1808 = vmatpush1.bf16.msra.mxu0 %v4691_v39 }
 0x7b1   : > { %1809 = vmatprep.subr.bf16.mxu0 %v4699_v49 }
 0x7b4   : > { %1810 = vmatpush1.bf16.msra.mxu0 %v4697_v51 }
 0x7b5   : > { %1811 = vmatprep.subr.bf16.mxu0 %v4705_v53 }
 0x7b8   : > { %1812 = vmatpush1.bf16.msra.mxu0 %v4703_v55 }
 0x7b9   : > { %1813 = vmatprep.subr.bf16.mxu0 %v4711_v56 }
 0x7bc   : > { %1814 = vmatpush1.bf16.msra.mxu0 %v4709_v47 }
 0x7bd   : > { %1815 = vmatprep.subr.bf16.mxu0 %v4717_v59 }
 0x7c0   : > { %1816 = vmatpush1.bf16.msra.mxu0 %v4715_v61 }
 0x7c1   : > { %1817 = vmatprep.subr.bf16.mxu0 %v4723_v63 }
 0x7c4   : > { %1818 = vmatpush1.bf16.msra.mxu0 %v4721_v2 }
 0x7c5   : > { %1819 = vmatprep.subr.bf16.mxu0 %v4729_v5 }
 0x7c8   : > { %1820 = vmatpush1.bf16.msra.mxu0 %v4727_v7 }
 0x86b   : > { %v1526_v41 = vpop.f32.mrf.mxu0 }
 0x86c   : > { %v1527_v42 = vadd.f32 %v3997_v40, %v1526_v41 }
 0x86d   : > { %v4444_v24 = vpop.f32.mrf.mxu0 }
 0x86e   : > { %v1532_v43 = vadd.f32 %v1527_v42, %v5914_v0  ;;  %v4708_v0 = vld [vmem:[#allocation16 + $0x64] ss:$16 sps:$4 sm:$0xff]  }
 0x86f   : > { %v1529_v44 = vpop.f32.mrf.mxu0  ;;  %1772 = vmatprep.subr.bf16.mxu1 %v4708_v0 }
 0x870   : > { %1533 = vst [vmem:[#allocation2] sm:$0xff] %v1532_v43  ;;  %v1535_v45 = vmul.f32 %v1532_v43, %v1532_v43  ;;  %1773 = vmatpush1.bf16.msra.mxu1 %v4706_v57 }
 0x871   : > { %v4445_v46 = vpop.f32.mrf.mxu0  ;;  %1774 = vmatprep.subr.bf16.mxu1 %v4714_v58 }
 0x872   : > { %1536 = vadd.xlane.f32.xlu1 %v1535_v45 }
 0x874   : > { %1775 = vmatpush1.bf16.msra.mxu1 %v4712_v60 }
 0x875   : > { %1776 = vmatprep.subr.bf16.mxu1 %v4720_v62 }
 0x878   : > { %1777 = vmatpush1.bf16.msra.mxu1 %v4718_v1 }
 0x879   : > { %1778 = vmatprep.subr.bf16.mxu1 %v4726_v4 }
 0x87c   : > { %1779 = vmatpush1.bf16.msra.mxu1 %v4724_v6 }
 0x8fb   : > { %v1537_v8 = vpop.xlane.xlu1 %1536 }
 0x8fc   : > { %v1538_v9 = vmul.f32 0.0078125, %v1537_v8 }
 0x8fe   : > { %v1539_v10 = vadd.f32 1.1920929e-07, %v1538_v9 }
 0x900   : > { %4748 = vrsqrt.f32 %v1539_v10 }
 0x90d   : > { %v4749_v11 = vpop.eup %4748 }
 0x90e   : > { %v1541_v14 = vmul.f32 %v4749_v11, %v1532_v43 }
 0x910   : > { %v1548_v15 = vmul.f32 %v4006_v12, %v1541_v14 }
 0x912   : > { %v1549_v16 = vpack.c.bf16 %v1548_v15, %v1548_v15 }
 0x914   : > { %1797 = vmatmul.mubr.bf16.vlgmr.msra.gmra.mxu1 %v1549_v16  ;;  %1838 = vmatmul.mubr.bf16.vlgmr.msra.gmra.mxu0 %v1549_v16 }
 0x9d4   : > { %v1798_v28 = vpop.f32.mrf.mxu1  ;;  %v1839_v29 = vpop.f32.mrf.mxu0 }
 0x9d5   : > { %v1799_v32 = vadd.f32 %v1798_v28, %v1587_v25  ;;  %v1840_v33 = vadd.f32 %v1839_v29, %v1595_v3 }
 0x9d6   : > { %v1800_v30 = vpop.f32.mrf.mxu1  ;;  %v1841_v31 = vpop.f32.mrf.mxu0 }
 0x9d7   : > { %v1801_v34 = vadd.f32 %v1800_v30, %v1591_v26  ;;  %v1842_v35 = vadd.f32 %v1841_v31, %v1599_v27 }
 0x9d8   : > { %v1802_v36 = vpop.f32.mrf.mxu1  ;;  %v1843_v37 = vpop.f32.mrf.mxu0 }
 0x9d9   : > { %v4278_v38 = vpack.c.bf16 %v1801_v34, %v1799_v32  ;;  %v4279_v13 = vpack.c.bf16 %v1842_v35, %v1840_v33 }
 0x9da   : > { %v1803_v39 = vpop.f32.mrf.mxu1  ;;  %v1844_v40 = vpop.f32.mrf.mxu0 }
 0x9db   : > { %1862 = vst [vmem:[#allocation3] sm:$0xff] %v4278_v38  ;;  %1863 = vst [vmem:[#allocation3 + $0x8] sm:$0xff] %v4279_v13 }
 0x9dc PF: > { %v4750_v41 = vld [vmem:[%s5892_s11 + $0xe4] ss:$16 sps:$4 sm:$0xff]   ;;  %v4754_v24 = vld [vmem:[%s5892_s11 + $0xe0] ss:$16 sps:$4 sm:$0xff]   ;;  %s6423_s14 = sld [smem:[#allocation31_spill]] }
 0x9dd   : > { %v4752_v42 = vld [vmem:[%s5892_s11 + $0x2e4] ss:$16 sps:$4 sm:$0xff]   ;;  %2674 = vmatprep.subr.bf16.mxu0 %v4750_v41  ;;  %v4755_v43 = vld [vmem:[%s5892_s11 + $0x2e0] ss:$16 sps:$4 sm:$0xff]  }
 0x9de   : > { %2715 = vmatprep.subr.bf16.mxu1 %v4752_v42  ;;  %v4756_v44 = vld [vmem:[%s5892_s11 + $0xc4] ss:$16 sps:$4 sm:$0xff]   ;;  %2675 = vmatpush1.bf16.msra.mxu0 %v4754_v24  ;;  %v4760_v46 = vld [vmem:[%s5892_s11 + $0xc0] ss:$16 sps:$4 sm:$0xff]  }
 0x9df   : > { %2716 = vmatpush1.bf16.msra.mxu1 %v4755_v43  ;;  %v4758_v45 = vld [vmem:[%s5892_s11 + $0x2c4] ss:$16 sps:$4 sm:$0xff]   ;;  %2676 = vmatprep.subr.bf16.mxu0 %v4756_v44  ;;  %v4761_v48 = vld [vmem:[%s5892_s11 + $0x2c0] ss:$16 sps:$4 sm:$0xff]   ;;  %v4852_v44 = vld [vmem:[%s5892_s11 + $0xec] ss:$16 sps:$4 sm:$0xff]  }
 0x9e0   : > { %2717 = vmatprep.subr.bf16.mxu1 %v4758_v45  ;;  %v4762_v49 = vld [vmem:[%s5892_s11 + $0xa4] ss:$16 sps:$4 sm:$0xff]   ;;  %v4766_v51 = vld [vmem:[%s5892_s11 + $0xa0] ss:$16 sps:$4 sm:$0xff]   ;;  %v4855_v45 = vld [vmem:[%s5892_s11 + $0x2ec] ss:$16 sps:$4 sm:$0xff]  }
 0x9e1   : > { %v4764_v50 = vld [vmem:[%s5892_s11 + $0x2a4] ss:$16 sps:$4 sm:$0xff]   ;;  %v4767_v52 = vld [vmem:[%s5892_s11 + $0x2a0] ss:$16 sps:$4 sm:$0xff]  }
 0x9e2   : > { %2677 = vmatpush1.bf16.msra.mxu0 %v4760_v46  ;;  %v4768_v53 = vld [vmem:[%s5892_s11 + $0x84] ss:$16 sps:$4 sm:$0xff]   ;;  %v4772_v55 = vld [vmem:[%s5892_s11 + $0x80] ss:$16 sps:$4 sm:$0xff]   ;;  %p4237_p12 = scmp.ne.s32.totalorder %s6423_s14, 1 }
 0x9e3   : > { %2718 = vmatpush1.bf16.msra.mxu1 %v4761_v48  ;;  %2678 = vmatprep.subr.bf16.mxu0 %v4762_v49  ;;  %v4770_v54 = vld [vmem:[%s5892_s11 + $0x284] ss:$16 sps:$4 sm:$0xff]   ;;  %v4773_v0 = vld [vmem:[%s5892_s11 + $0x280] ss:$16 sps:$4 sm:$0xff]   ;;  %v4850_v49 = vld [vmem:[%s5892_s11 + $0xe8] ss:$16 sps:$4 sm:$0xff]  }
 0x9e4   : > { %2719 = vmatprep.subr.bf16.mxu1 %v4764_v50  ;;  %v4774_v56 = vld [vmem:[%s5892_s11 + $0x64] ss:$16 sps:$4 sm:$0xff]   ;;  %v4778_v47 = vld [vmem:[%s5892_s11 + $0x60] ss:$16 sps:$4 sm:$0xff]   ;;  %v4853_v50 = vld [vmem:[%s5892_s11 + $0x2e8] ss:$16 sps:$4 sm:$0xff]  }
 0x9e5   : > { %v4776_v57 = vld [vmem:[%s5892_s11 + $0x264] ss:$16 sps:$4 sm:$0xff]   ;;  %v4779_v58 = vld [vmem:[%s5892_s11 + $0x260] ss:$16 sps:$4 sm:$0xff]   ;;  %s6425_s26 = sld [smem:[#allocation51_spill]] (!%p4237_p12) }
 0x9e6   : > { %2679 = vmatpush1.bf16.msra.mxu0 %v4766_v51  ;;  %v4780_v59 = vld [vmem:[%s5892_s11 + $0x44] ss:$16 sps:$4 sm:$0xff]   ;;  %v4784_v61 = vld [vmem:[%s5892_s11 + $0x40] ss:$16 sps:$4 sm:$0xff]   ;;  %v4858_v51 = vld [vmem:[%s5892_s11 + $0xcc] ss:$16 sps:$4 sm:$0xff]  }
 0x9e7   : > { %2720 = vmatpush1.bf16.msra.mxu1 %v4767_v52  ;;  %2680 = vmatprep.subr.bf16.mxu0 %v4768_v53  ;;  %v4782_v60 = vld [vmem:[%s5892_s11 + $0x244] ss:$16 sps:$4 sm:$0xff]   ;;  %v4785_v62 = vld [vmem:[%s5892_s11 + $0x240] ss:$16 sps:$4 sm:$0xff]   ;;  %v4861_v52 = vld [vmem:[%s5892_s11 + $0x2cc] ss:$16 sps:$4 sm:$0xff]  }
 0x9e8   : > { %2721 = vmatprep.subr.bf16.mxu1 %v4770_v54  ;;  %v4786_v63 = vld [vmem:[%s5892_s11 + $0x24] ss:$16 sps:$4 sm:$0xff]   ;;  %v4790_v2 = vld [vmem:[%s5892_s11 + $0x20] ss:$16 sps:$4 sm:$0xff]   ;;  %v4856_v53 = vld [vmem:[%s5892_s11 + $0xc8] ss:$16 sps:$4 sm:$0xff]  }
 0x9e9   : > { %v4788_v1 = vld [vmem:[%s5892_s11 + $0x224] ss:$16 sps:$4 sm:$0xff]   ;;  %v4791_v4 = vld [vmem:[%s5892_s11 + $0x220] ss:$16 sps:$4 sm:$0xff]   ;;  %v4859_v54 = vld [vmem:[%s5892_s11 + $0x2c8] ss:$16 sps:$4 sm:$0xff]  }
 0x9ea   : > { %2681 = vmatpush1.bf16.msra.mxu0 %v4772_v55  ;;  %v4792_v5 = vld [vmem:[%s5892_s11 + $0x4] ss:$16 sps:$4 sm:$0xff]   ;;  %v4796_v7 = vld [vmem:[%s5892_s11] ss:$16 sps:$4 sm:$0xff]   ;;  %v4864_v55 = vld [vmem:[%s5892_s11 + $0xac] ss:$16 sps:$4 sm:$0xff]  }
 0x9eb   : > { %2722 = vmatpush1.bf16.msra.mxu1 %v4773_v0  ;;  %2682 = vmatprep.subr.bf16.mxu0 %v4774_v56  ;;  %v4794_v6 = vld [vmem:[%s5892_s11 + $0x204] ss:$16 sps:$4 sm:$0xff]   ;;  %v4797_v8 = vld [vmem:[%s5892_s11 + $0x200] ss:$16 sps:$4 sm:$0xff]   ;;  %v4867_v0 = vld [vmem:[%s5892_s11 + $0x2ac] ss:$16 sps:$4 sm:$0xff]  }
 0x9ec   : > { %2723 = vmatprep.subr.bf16.mxu1 %v4776_v57  ;;  %v4798_v9 = vld [vmem:[%s5892_s11 + $0x1e4] ss:$16 sps:$4 sm:$0xff]   ;;  %v4802_v11 = vld [vmem:[%s5892_s11 + $0x1e0] ss:$16 sps:$4 sm:$0xff]   ;;  %v4862_v56 = vld [vmem:[%s5892_s11 + $0xa8] ss:$16 sps:$4 sm:$0xff]  }
 0x9ed   : > { %v4800_v10 = vld [vmem:[%s5892_s11 + $0x3e4] ss:$16 sps:$4 sm:$0xff]   ;;  %v4803_v12 = vld [vmem:[%s5892_s11 + $0x3e0] ss:$16 sps:$4 sm:$0xff]   ;;  %v4865_v57 = vld [vmem:[%s5892_s11 + $0x2a8] ss:$16 sps:$4 sm:$0xff]  }
 0x9ee   : > { %2683 = vmatpush1.bf16.msra.mxu0 %v4778_v47  ;;  %v4804_v14 = vld [vmem:[%s5892_s11 + $0x1c4] ss:$16 sps:$4 sm:$0xff]   ;;  %v4808_v16 = vld [vmem:[%s5892_s11 + $0x1c0] ss:$16 sps:$4 sm:$0xff]   ;;  %v4870_v47 = vld [vmem:[%s5892_s11 + $0x8c] ss:$16 sps:$4 sm:$0xff]  }
 0x9ef   : > { %2724 = vmatpush1.bf16.msra.mxu1 %v4779_v58  ;;  %2684 = vmatprep.subr.bf16.mxu0 %v4780_v59  ;;  %v4806_v15 = vld [vmem:[%s5892_s11 + $0x3c4] ss:$16 sps:$4 sm:$0xff]   ;;  %v4809_v17 = vld [vmem:[%s5892_s11 + $0x3c0] ss:$16 sps:$4 sm:$0xff]   ;;  %v4873_v58 = vld [vmem:[%s5892_s11 + $0x28c] ss:$16 sps:$4 sm:$0xff]  }
 0x9f0   : > { %2725 = vmatprep.subr.bf16.mxu1 %v4782_v60  ;;  %v4810_v18 = vld [vmem:[%s5892_s11 + $0x1a4] ss:$16 sps:$4 sm:$0xff]   ;;  %v4814_v20 = vld [vmem:[%s5892_s11 + $0x1a0] ss:$16 sps:$4 sm:$0xff]   ;;  %v4868_v59 = vld [vmem:[%s5892_s11 + $0x88] ss:$16 sps:$4 sm:$0xff]  }
 0x9f1   : > { %v4812_v19 = vld [vmem:[%s5892_s11 + $0x3a4] ss:$16 sps:$4 sm:$0xff]   ;;  %v4815_v21 = vld [vmem:[%s5892_s11 + $0x3a0] ss:$16 sps:$4 sm:$0xff]   ;;  %v4871_v60 = vld [vmem:[%s5892_s11 + $0x288] ss:$16 sps:$4 sm:$0xff]  }
 0x9f2   : > { %2685 = vmatpush1.bf16.msra.mxu0 %v4784_v61  ;;  %v4816_v22 = vld [vmem:[%s5892_s11 + $0x184] ss:$16 sps:$4 sm:$0xff]   ;;  %v1868_v25 = vld [vmem:[#allocation3] sm:$0xff] }
 0x9f3   : > { %2726 = vmatpush1.bf16.msra.mxu1 %v4785_v62  ;;  %2686 = vmatprep.subr.bf16.mxu0 %v4786_v63  ;;  %v4818_v23 = vld [vmem:[%s5892_s11 + $0x384] ss:$16 sps:$4 sm:$0xff]   ;;  %v6067_v3 = vcombine.high %v1868_v25, %v1868_v25  ;;  %v4820_v27 = vld [vmem:[%s5892_s11 + $0x180] ss:$16 sps:$4 sm:$0xff]   ;;  %v6090_v46 = vcombine.low %v1868_v25, %v1868_v25  ;;  %v4876_v61 = vld [vmem:[%s5892_s11 + $0x6c] ss:$16 sps:$4 sm:$0xff]  }
 0x9f4   : > { %2727 = vmatprep.subr.bf16.mxu1 %v4788_v1  ;;  %v1869_v26 = vld [vmem:[#allocation3 + $0x8] sm:$0xff]  ;;  %v4879_v62 = vld [vmem:[%s5892_s11 + $0x26c] ss:$16 sps:$4 sm:$0xff]  }
 0x9f5   : > { %v4821_v28 = vld [vmem:[%s5892_s11 + $0x380] ss:$16 sps:$4 sm:$0xff]   ;;  %v4044_v29 = vcombine.high %v1869_v26, %v1869_v26  ;;  %v4822_v30 = vld [vmem:[%s5892_s11 + $0x164] ss:$16 sps:$4 sm:$0xff]   ;;  %2706 = vmatprep.mubr.bf16.mxu0 %v6067_v3  ;;  %v6092_v48 = vcombine.low %v1869_v26, %v1869_v26  ;;  %v4874_v63 = vld [vmem:[%s5892_s11 + $0x68] ss:$16 sps:$4 sm:$0xff]  }
 0x9f6   : > { %2687 = vmatpush1.bf16.msra.mxu0 %v4790_v2  ;;  %v4824_v31 = vld [vmem:[%s5892_s11 + $0x364] ss:$16 sps:$4 sm:$0xff]   ;;  %v4826_v32 = vld [vmem:[%s5892_s11 + $0x160] ss:$16 sps:$4 sm:$0xff]   ;;  %v4877_v1 = vld [vmem:[%s5892_s11 + $0x268] ss:$16 sps:$4 sm:$0xff]  }
 0x9f7   : > { %2728 = vmatpush1.bf16.msra.mxu1 %v4791_v4  ;;  %2688 = vmatprep.subr.bf16.mxu0 %v4792_v5  ;;  %v4827_v33 = vld [vmem:[%s5892_s11 + $0x360] ss:$16 sps:$4 sm:$0xff]   ;;  %v4828_v34 = vld [vmem:[%s5892_s11 + $0x144] ss:$16 sps:$4 sm:$0xff]   ;;  %v4882_v2 = vld [vmem:[%s5892_s11 + $0x4c] ss:$16 sps:$4 sm:$0xff]  }
 0x9f8   : > { %2729 = vmatprep.subr.bf16.mxu1 %v4794_v6  ;;  %2747 = vmatprep.mubr.bf16.mxu1 %v4044_v29  ;;  %v4830_v35 = vld [vmem:[%s5892_s11 + $0x344] ss:$16 sps:$4 sm:$0xff]   ;;  %v4832_v36 = vld [vmem:[%s5892_s11 + $0x140] ss:$16 sps:$4 sm:$0xff]   ;;  %v4885_v4 = vld [vmem:[%s5892_s11 + $0x24c] ss:$16 sps:$4 sm:$0xff]  }
 0x9f9   : > { %v4833_v37 = vld [vmem:[%s5892_s11 + $0x340] ss:$16 sps:$4 sm:$0xff]   ;;  %v4834_v38 = vld [vmem:[%s5892_s11 + $0x124] ss:$16 sps:$4 sm:$0xff]   ;;  %v4880_v5 = vld [vmem:[%s5892_s11 + $0x48] ss:$16 sps:$4 sm:$0xff]  }
 0x9fa   : > { %2689 = vmatpush1.bf16.msra.mxu0 %v4796_v7  ;;  %v4836_v13 = vld [vmem:[%s5892_s11 + $0x324] ss:$16 sps:$4 sm:$0xff]   ;;  %v4838_v39 = vld [vmem:[%s5892_s11 + $0x120] ss:$16 sps:$4 sm:$0xff]   ;;  %v4883_v6 = vld [vmem:[%s5892_s11 + $0x248] ss:$16 sps:$4 sm:$0xff]  }
 0x9fb   : > { %2730 = vmatpush1.bf16.msra.mxu1 %v4797_v8  ;;  %2690 = vmatprep.subr.bf16.mxu0 %v4798_v9  ;;  %v4839_v40 = vld [vmem:[%s5892_s11 + $0x320] ss:$16 sps:$4 sm:$0xff]   ;;  %v4840_v41 = vld [vmem:[%s5892_s11 + $0x104] ss:$16 sps:$4 sm:$0xff]   ;;  %v4888_v7 = vld [vmem:[%s5892_s11 + $0x2c] ss:$16 sps:$4 sm:$0xff]  }
 0x9fc   : > { %2731 = vmatprep.subr.bf16.mxu1 %v4800_v10  ;;  %v4842_v42 = vld [vmem:[%s5892_s11 + $0x304] ss:$16 sps:$4 sm:$0xff]   ;;  %v4844_v24 = vld [vmem:[%s5892_s11 + $0x100] ss:$16 sps:$4 sm:$0xff]   ;;  %v4891_v8 = vld [vmem:[%s5892_s11 + $0x22c] ss:$16 sps:$4 sm:$0xff]  }
 0x9fd   : > { %v4845_v43 = vld [vmem:[%s5892_s11 + $0x300] ss:$16 sps:$4 sm:$0xff]   ;;  %v4886_v9 = vld [vmem:[%s5892_s11 + $0x28] ss:$16 sps:$4 sm:$0xff]   ;;  %v4912_v25 = vld [vmem:[%s5892_s11 + $0x1ac] ss:$16 sps:$4 sm:$0xff]  }
 0x9fe   : > { %2691 = vmatpush2.bf16.msra.mxu0 %v4802_v11  ;;  %v4889_v10 = vld [vmem:[%s5892_s11 + $0x228] ss:$16 sps:$4 sm:$0xff]   ;;  %v4894_v11 = vld [vmem:[%s5892_s11 + $0xc] ss:$16 sps:$4 sm:$0xff]  }
 0x9ff   : > { %2732 = vmatpush2.bf16.msra.mxu1 %v4803_v12  ;;  %2692 = vmatprep.subr.bf16.mxu0 %v4804_v14  ;;  %v4897_v12 = vld [vmem:[%s5892_s11 + $0x20c] ss:$16 sps:$4 sm:$0xff]   ;;  %v4892_v14 = vld [vmem:[%s5892_s11 + $0x8] ss:$16 sps:$4 sm:$0xff]  }
 0xa00   : > { %2733 = vmatprep.subr.bf16.mxu1 %v4806_v15  ;;  %v4895_v15 = vld [vmem:[%s5892_s11 + $0x208] ss:$16 sps:$4 sm:$0xff]  }
 0xa01   : > { %v4910_v26 = vld [vmem:[%s5892_s11 + $0x1a8] ss:$16 sps:$4 sm:$0xff]  }
 0xa02   : > { %2693 = vmatpush2.bf16.msra.mxu0 %v4808_v16  ;;  %v4900_v16 = vld [vmem:[%s5892_s11 + $0x1ec] ss:$16 sps:$4 sm:$0xff]  }
 0xa03   : > { %2734 = vmatpush2.bf16.msra.mxu1 %v4809_v17  ;;  %2694 = vmatprep.subr.bf16.mxu0 %v4810_v18  ;;  %v4903_v17 = vld [vmem:[%s5892_s11 + $0x3ec] ss:$16 sps:$4 sm:$0xff]   ;;  %v4898_v18 = vld [vmem:[%s5892_s11 + $0x1e8] ss:$16 sps:$4 sm:$0xff]  }
 0xa04   : > { %2735 = vmatprep.subr.bf16.mxu1 %v4812_v19  ;;  %v4901_v19 = vld [vmem:[%s5892_s11 + $0x3e8] ss:$16 sps:$4 sm:$0xff]  }
 0xa06   : > { %2695 = vmatpush2.bf16.msra.mxu0 %v4814_v20  ;;  %v4906_v20 = vld [vmem:[%s5892_s11 + $0x1cc] ss:$16 sps:$4 sm:$0xff]  }
 0xa07   : > { %2736 = vmatpush2.bf16.msra.mxu1 %v4815_v21  ;;  %2696 = vmatprep.subr.bf16.mxu0 %v4816_v22  ;;  %v4909_v21 = vld [vmem:[%s5892_s11 + $0x3cc] ss:$16 sps:$4 sm:$0xff]   ;;  %v4904_v22 = vld [vmem:[%s5892_s11 + $0x1c8] ss:$16 sps:$4 sm:$0xff]  }
 0xa08   : > { %2737 = vmatprep.subr.bf16.mxu1 %v4818_v23  ;;  %v4907_v23 = vld [vmem:[%s5892_s11 + $0x3c8] ss:$16 sps:$4 sm:$0xff]  }
 0xa0a   : > { %2697 = vmatpush2.bf16.msra.mxu0 %v4820_v27  ;;  %v4913_v27 = vld [vmem:[%s5892_s11 + $0x3a8] ss:$16 sps:$4 sm:$0xff]  }
 0xa0b   : > { %2738 = vmatpush2.bf16.msra.mxu1 %v4821_v28  ;;  %2698 = vmatprep.subr.bf16.mxu0 %v4822_v30  ;;  %v4918_v28 = vld [vmem:[%s5892_s11 + $0x18c] ss:$16 sps:$4 sm:$0xff]   ;;  %v4916_v30 = vld [vmem:[%s5892_s11 + $0x188] ss:$16 sps:$4 sm:$0xff]  }
 0xa0c   : > { %2739 = vmatprep.subr.bf16.mxu1 %v4824_v31  ;;  %v4919_v31 = vld [vmem:[%s5892_s11 + $0x388] ss:$16 sps:$4 sm:$0xff]  }
 0xa0e   : > { %2699 = vmatpush2.bf16.msra.mxu0 %v4826_v32  ;;  %v4924_v32 = vld [vmem:[%s5892_s11 + $0x16c] ss:$16 sps:$4 sm:$0xff]  }
 0xa0f   : > { %2740 = vmatpush2.bf16.msra.mxu1 %v4827_v33  ;;  %2700 = vmatprep.subr.bf16.mxu0 %v4828_v34  ;;  %v4927_v33 = vld [vmem:[%s5892_s11 + $0x36c] ss:$16 sps:$4 sm:$0xff]   ;;  %v4922_v34 = vld [vmem:[%s5892_s11 + $0x168] ss:$16 sps:$4 sm:$0xff]  }
 0xa10   : > { %2741 = vmatprep.subr.bf16.mxu1 %v4830_v35  ;;  %v4925_v35 = vld [vmem:[%s5892_s11 + $0x368] ss:$16 sps:$4 sm:$0xff]  }
 0xa12   : > { %2701 = vmatpush2.bf16.msra.mxu0 %v4832_v36  ;;  %v4930_v36 = vld [vmem:[%s5892_s11 + $0x14c] ss:$16 sps:$4 sm:$0xff]  }
 0xa13   : > { %2742 = vmatpush2.bf16.msra.mxu1 %v4833_v37  ;;  %2702 = vmatprep.subr.bf16.mxu0 %v4834_v38  ;;  %v4933_v37 = vld [vmem:[%s5892_s11 + $0x34c] ss:$16 sps:$4 sm:$0xff]   ;;  %v4928_v38 = vld [vmem:[%s5892_s11 + $0x148] ss:$16 sps:$4 sm:$0xff]  }
 0xa14   : > { %2743 = vmatprep.subr.bf16.mxu1 %v4836_v13  ;;  %v4931_v13 = vld [vmem:[%s5892_s11 + $0x348] ss:$16 sps:$4 sm:$0xff]  }
 0xa16   : > { %2703 = vmatpush2.bf16.msra.mxu0 %v4838_v39  ;;  %v4936_v39 = vld [vmem:[%s5892_s11 + $0x12c] ss:$16 sps:$4 sm:$0xff]  }
 0xa17   : > { %2744 = vmatpush2.bf16.msra.mxu1 %v4839_v40  ;;  %2704 = vmatprep.subr.bf16.mxu0 %v4840_v41  ;;  %v4939_v40 = vld [vmem:[%s5892_s11 + $0x32c] ss:$16 sps:$4 sm:$0xff]   ;;  %v4934_v41 = vld [vmem:[%s5892_s11 + $0x128] ss:$16 sps:$4 sm:$0xff]  }
 0xa18   : > { %2745 = vmatprep.subr.bf16.mxu1 %v4842_v42  ;;  %v4937_v42 = vld [vmem:[%s5892_s11 + $0x328] ss:$16 sps:$4 sm:$0xff]  }
 0xa1a   : > { %2705 = vmatpush2.bf16.msra.mxu0 %v4844_v24  ;;  %v4942_v24 = vld [vmem:[%s5892_s11 + $0x10c] ss:$16 sps:$4 sm:$0xff]  }
 0xa1b   : > { %2746 = vmatpush2.bf16.msra.mxu1 %v4845_v43  ;;  %2756 = vmatprep.subr.bf16.mxu0 %v4852_v44  ;;  %v4945_v43 = vld [vmem:[%s5892_s11 + $0x30c] ss:$16 sps:$4 sm:$0xff]   ;;  %v4940_v44 = vld [vmem:[%s5892_s11 + $0x108] ss:$16 sps:$4 sm:$0xff]  }
 0xa1c   : > { %2797 = vmatprep.subr.bf16.mxu1 %v4855_v45  ;;  %v4943_v45 = vld [vmem:[%s5892_s11 + $0x308] ss:$16 sps:$4 sm:$0xff]  }
 0xa1d   : > { %2707 = vmatmul.mubr.bf16.vlgmr.msra.gmra.mxu0 %v6090_v46 }
 0xa1e   : > { %2748 = vmatmul.mubr.bf16.vlgmr.msra.gmra.mxu1 %v6092_v48  ;;  %2757 = vmatpush1.bf16.msra.mxu0 %v4850_v49  ;;  %v4948_v49 = vld [vmem:[%s5898_s29 + $0xe4] ss:$16 sps:$4 sm:$0xff]  }
 0xa1f   : > { %2798 = vmatpush1.bf16.msra.mxu1 %v4853_v50  ;;  %2758 = vmatprep.subr.bf16.mxu0 %v4858_v51  ;;  %v4951_v50 = vld [vmem:[%s5898_s29 + $0xec] ss:$16 sps:$4 sm:$0xff]   ;;  %v4946_v51 = vld [vmem:[%s5898_s29 + $0xe0] ss:$16 sps:$4 sm:$0xff]  }
 0xa20   : > { %2799 = vmatprep.subr.bf16.mxu1 %v4861_v52  ;;  %2788 = vmatprep.mubr.bf16.mxu0 %v6067_v3  ;;  %v4915_v3 = vld [vmem:[%s5892_s11 + $0x3ac] ss:$16 sps:$4 sm:$0xff]   ;;  %v4949_v52 = vld [vmem:[%s5898_s29 + $0xe8] ss:$16 sps:$4 sm:$0xff]  }
 0xa21   : > { %2829 = vmatprep.mubr.bf16.mxu1 %v4044_v29  ;;  %v4921_v29 = vld [vmem:[%s5892_s11 + $0x38c] ss:$16 sps:$4 sm:$0xff]  }
 0xa22   : > { %2759 = vmatpush1.bf16.msra.mxu0 %v4856_v53  ;;  %v4954_v53 = vld [vmem:[%s5898_s29 + $0xc4] ss:$16 sps:$4 sm:$0xff]  }
 0xa23   : > { %2800 = vmatpush1.bf16.msra.mxu1 %v4859_v54  ;;  %2760 = vmatprep.subr.bf16.mxu0 %v4864_v55  ;;  %v4957_v54 = vld [vmem:[%s5898_s29 + $0xcc] ss:$16 sps:$4 sm:$0xff]   ;;  %v4952_v55 = vld [vmem:[%s5898_s29 + $0xc0] ss:$16 sps:$4 sm:$0xff]  }
 0xa24   : > { %2801 = vmatprep.subr.bf16.mxu1 %v4867_v0  ;;  %v4963_v0 = vld [vmem:[%s5898_s29 + $0xac] ss:$16 sps:$4 sm:$0xff]  }
 0xa26   : > { %2761 = vmatpush1.bf16.msra.mxu0 %v4862_v56  ;;  %v4958_v56 = vld [vmem:[%s5898_s29 + $0xa0] ss:$16 sps:$4 sm:$0xff]  }
 0xa27   : > { %2802 = vmatpush1.bf16.msra.mxu1 %v4865_v57  ;;  %2762 = vmatprep.subr.bf16.mxu0 %v4870_v47  ;;  %v4961_v57 = vld [vmem:[%s5898_s29 + $0xa8] ss:$16 sps:$4 sm:$0xff]   ;;  %v4966_v47 = vld [vmem:[%s5898_s29 + $0x84] ss:$16 sps:$4 sm:$0xff]  }
 0xa28   : > { %2803 = vmatprep.subr.bf16.mxu1 %v4873_v58  ;;  %v4969_v58 = vld [vmem:[%s5898_s29 + $0x8c] ss:$16 sps:$4 sm:$0xff]  }
 0xa2a   : > { %2763 = vmatpush1.bf16.msra.mxu0 %v4868_v59  ;;  %v4964_v59 = vld [vmem:[%s5898_s29 + $0x80] ss:$16 sps:$4 sm:$0xff]  }
 0xa2b   : > { %2804 = vmatpush1.bf16.msra.mxu1 %v4871_v60  ;;  %2764 = vmatprep.subr.bf16.mxu0 %v4876_v61  ;;  %v4967_v60 = vld [vmem:[%s5898_s29 + $0x88] ss:$16 sps:$4 sm:$0xff]   ;;  %v4972_v61 = vld [vmem:[%s5898_s29 + $0x64] ss:$16 sps:$4 sm:$0xff]  }
 0xa2c   : > { %2805 = vmatprep.subr.bf16.mxu1 %v4879_v62  ;;  %v4975_v62 = vld [vmem:[%s5898_s29 + $0x6c] ss:$16 sps:$4 sm:$0xff]  }
 0xa2e   : > { %2765 = vmatpush1.bf16.msra.mxu0 %v4874_v63  ;;  %v4970_v63 = vld [vmem:[%s5898_s29 + $0x60] ss:$16 sps:$4 sm:$0xff]  }
 0xa2f   : > { %2806 = vmatpush1.bf16.msra.mxu1 %v4877_v1  ;;  %2766 = vmatprep.subr.bf16.mxu0 %v4882_v2  ;;  %v4973_v1 = vld [vmem:[%s5898_s29 + $0x68] ss:$16 sps:$4 sm:$0xff]   ;;  %v4978_v2 = vld [vmem:[%s5898_s29 + $0x44] ss:$16 sps:$4 sm:$0xff]  }
 0xa30   : > { %2807 = vmatprep.subr.bf16.mxu1 %v4885_v4  ;;  %v4981_v4 = vld [vmem:[%s5898_s29 + $0x4c] ss:$16 sps:$4 sm:$0xff]  }
 0xa32   : > { %2767 = vmatpush1.bf16.msra.mxu0 %v4880_v5  ;;  %v4976_v5 = vld [vmem:[%s5898_s29 + $0x40] ss:$16 sps:$4 sm:$0xff]  }
 0xa33   : > { %2808 = vmatpush1.bf16.msra.mxu1 %v4883_v6  ;;  %2768 = vmatprep.subr.bf16.mxu0 %v4888_v7  ;;  %v4979_v6 = vld [vmem:[%s5898_s29 + $0x48] ss:$16 sps:$4 sm:$0xff]   ;;  %v4984_v7 = vld [vmem:[%s5898_s29 + $0x24] ss:$16 sps:$4 sm:$0xff]  }
 0xa34   : > { %2809 = vmatprep.subr.bf16.mxu1 %v4891_v8  ;;  %v4987_v8 = vld [vmem:[%s5898_s29 + $0x2c] ss:$16 sps:$4 sm:$0xff]  }
 0xa36   : > { %2769 = vmatpush1.bf16.msra.mxu0 %v4886_v9  ;;  %v4982_v9 = vld [vmem:[%s5898_s29 + $0x20] ss:$16 sps:$4 sm:$0xff]  }
 0xa37   : > { %2810 = vmatpush1.bf16.msra.mxu1 %v4889_v10  ;;  %2770 = vmatprep.subr.bf16.mxu0 %v4894_v11  ;;  %v4985_v10 = vld [vmem:[%s5898_s29 + $0x28] ss:$16 sps:$4 sm:$0xff]   ;;  %v4990_v11 = vld [vmem:[%s5898_s29 + $0x4] ss:$16 sps:$4 sm:$0xff]  }
 0xa38   : > { %2811 = vmatprep.subr.bf16.mxu1 %v4897_v12  ;;  %v4993_v12 = vld [vmem:[%s5898_s29 + $0xc] ss:$16 sps:$4 sm:$0xff]  }
 0xa3a   : > { %2771 = vmatpush1.bf16.msra.mxu0 %v4892_v14  ;;  %v4988_v14 = vld [vmem:[%s5898_s29] ss:$16 sps:$4 sm:$0xff]  }
 0xa3b   : > { %2812 = vmatpush1.bf16.msra.mxu1 %v4895_v15  ;;  %2772 = vmatprep.subr.bf16.mxu0 %v4900_v16  ;;  %v4991_v15 = vld [vmem:[%s5898_s29 + $0x8] ss:$16 sps:$4 sm:$0xff]   ;;  %v4994_v16 = vld [vmem:[%s5898_s29 + $0x1e0] ss:$16 sps:$4 sm:$0xff]  }
 0xa3c   : > { %2813 = vmatprep.subr.bf16.mxu1 %v4903_v17  ;;  %v4996_v17 = vld [vmem:[%s5898_s29 + $0x1e4] ss:$16 sps:$4 sm:$0xff]  }
 0xa3e   : > { %2773 = vmatpush2.bf16.msra.mxu0 %v4898_v18  ;;  %v4997_v18 = vld [vmem:[%s5898_s29 + $0x1e8] ss:$16 sps:$4 sm:$0xff]  }
 0xa3f   : > { %2814 = vmatpush2.bf16.msra.mxu1 %v4901_v19  ;;  %2774 = vmatprep.subr.bf16.mxu0 %v4906_v20  ;;  %v4999_v19 = vld [vmem:[%s5898_s29 + $0x1ec] ss:$16 sps:$4 sm:$0xff]   ;;  %v5002_v20 = vld [vmem:[%s5898_s29 + $0x1c4] ss:$16 sps:$4 sm:$0xff]  }
 0xa40   : > { %2815 = vmatprep.subr.bf16.mxu1 %v4909_v21  ;;  %v5005_v21 = vld [vmem:[%s5898_s29 + $0x1cc] ss:$16 sps:$4 sm:$0xff]  }
 0xa42   : > { %2775 = vmatpush2.bf16.msra.mxu0 %v4904_v22  ;;  %v5000_v22 = vld [vmem:[%s5898_s29 + $0x1c0] ss:$16 sps:$4 sm:$0xff]  }
 0xa43   : > { %2816 = vmatpush2.bf16.msra.mxu1 %v4907_v23  ;;  %2776 = vmatprep.subr.bf16.mxu0 %v4912_v25  ;;  %v5003_v23 = vld [vmem:[%s5898_s29 + $0x1c8] ss:$16 sps:$4 sm:$0xff]   ;;  %v5008_v25 = vld [vmem:[%s5898_s29 + $0x1a4] ss:$16 sps:$4 sm:$0xff]  }
 0xa44   : > { %2817 = vmatprep.subr.bf16.mxu1 %v4915_v3  ;;  %v5011_v3 = vld [vmem:[%s5898_s29 + $0x1ac] ss:$16 sps:$4 sm:$0xff]  }
 0xa46   : > { %2777 = vmatpush2.bf16.msra.mxu0 %v4910_v26  ;;  %v5006_v26 = vld [vmem:[%s5898_s29 + $0x1a0] ss:$16 sps:$4 sm:$0xff]  }
 0xa47   : > { %2818 = vmatpush2.bf16.msra.mxu1 %v4913_v27  ;;  %2778 = vmatprep.subr.bf16.mxu0 %v4918_v28  ;;  %v5009_v27 = vld [vmem:[%s5898_s29 + $0x1a8] ss:$16 sps:$4 sm:$0xff]   ;;  %v5014_v28 = vld [vmem:[%s5898_s29 + $0x184] ss:$16 sps:$4 sm:$0xff]  }
 0xa48   : > { %2819 = vmatprep.subr.bf16.mxu1 %v4921_v29  ;;  %v5017_v29 = vld [vmem:[%s5898_s29 + $0x18c] ss:$16 sps:$4 sm:$0xff]  }
 0xa4a   : > { %2779 = vmatpush2.bf16.msra.mxu0 %v4916_v30  ;;  %v5012_v30 = vld [vmem:[%s5898_s29 + $0x180] ss:$16 sps:$4 sm:$0xff]  }
 0xa4b   : > { %2820 = vmatpush2.bf16.msra.mxu1 %v4919_v31  ;;  %2780 = vmatprep.subr.bf16.mxu0 %v4924_v32  ;;  %v5015_v31 = vld [vmem:[%s5898_s29 + $0x188] ss:$16 sps:$4 sm:$0xff]   ;;  %v5020_v32 = vld [vmem:[%s5898_s29 + $0x164] ss:$16 sps:$4 sm:$0xff]  }
 0xa4c   : > { %2821 = vmatprep.subr.bf16.mxu1 %v4927_v33  ;;  %v5023_v33 = vld [vmem:[%s5898_s29 + $0x16c] ss:$16 sps:$4 sm:$0xff]  }
 0xa4e   : > { %2781 = vmatpush2.bf16.msra.mxu0 %v4922_v34  ;;  %v5018_v34 = vld [vmem:[%s5898_s29 + $0x160] ss:$16 sps:$4 sm:$0xff]  }
 0xa4f   : > { %2822 = vmatpush2.bf16.msra.mxu1 %v4925_v35  ;;  %2782 = vmatprep.subr.bf16.mxu0 %v4930_v36  ;;  %v5021_v35 = vld [vmem:[%s5898_s29 + $0x168] ss:$16 sps:$4 sm:$0xff]   ;;  %v5026_v36 = vld [vmem:[%s5898_s29 + $0x144] ss:$16 sps:$4 sm:$0xff]  }
 0xa50   : > { %2823 = vmatprep.subr.bf16.mxu1 %v4933_v37  ;;  %v5029_v37 = vld [vmem:[%s5898_s29 + $0x14c] ss:$16 sps:$4 sm:$0xff]  }
 0xa52   : > { %2783 = vmatpush2.bf16.msra.mxu0 %v4928_v38  ;;  %v5024_v38 = vld [vmem:[%s5898_s29 + $0x140] ss:$16 sps:$4 sm:$0xff]  }
 0xa53   : > { %2824 = vmatpush2.bf16.msra.mxu1 %v4931_v13  ;;  %2784 = vmatprep.subr.bf16.mxu0 %v4936_v39  ;;  %v5027_v13 = vld [vmem:[%s5898_s29 + $0x148] ss:$16 sps:$4 sm:$0xff]   ;;  %v5032_v39 = vld [vmem:[%s5898_s29 + $0x124] ss:$16 sps:$4 sm:$0xff]  }
 0xa54   : > { %2825 = vmatprep.subr.bf16.mxu1 %v4939_v40  ;;  %v5035_v40 = vld [vmem:[%s5898_s29 + $0x12c] ss:$16 sps:$4 sm:$0xff]  }
 0xa56   : > { %2785 = vmatpush2.bf16.msra.mxu0 %v4934_v41  ;;  %v5030_v41 = vld [vmem:[%s5898_s29 + $0x120] ss:$16 sps:$4 sm:$0xff]  }
 0xa57   : > { %2826 = vmatpush2.bf16.msra.mxu1 %v4937_v42  ;;  %2786 = vmatprep.subr.bf16.mxu0 %v4942_v24  ;;  %v5033_v42 = vld [vmem:[%s5898_s29 + $0x128] ss:$16 sps:$4 sm:$0xff]   ;;  %v5038_v24 = vld [vmem:[%s5898_s29 + $0x104] ss:$16 sps:$4 sm:$0xff]  }
 0xa58   : > { %2827 = vmatprep.subr.bf16.mxu1 %v4945_v43  ;;  %v5041_v43 = vld [vmem:[%s5898_s29 + $0x10c] ss:$16 sps:$4 sm:$0xff]  }
 0xa5a   : > { %2787 = vmatpush2.bf16.msra.mxu0 %v4940_v44  ;;  %v5036_v44 = vld [vmem:[%s5898_s29 + $0x100] ss:$16 sps:$4 sm:$0xff]  }
 0xa5b   : > { %2828 = vmatpush2.bf16.msra.mxu1 %v4943_v45  ;;  %3242 = vmatprep.subr.bf16.mxu0 %v4948_v49  ;;  %v5039_v45 = vld [vmem:[%s5898_s29 + $0x108] ss:$16 sps:$4 sm:$0xff]   ;;  %v2000_v49 = vlaneseq }
 0xa5c   : > { %3283 = vmatprep.subr.bf16.mxu1 %v4951_v50 }
 0xa5d   : > { %2789 = vmatmul.mubr.bf16.vlgmr.msra.gmra.mxu0 %v6090_v46  ;;  %v4955_v46 = vld [vmem:[%s5898_s29 + $0xc8] ss:$16 sps:$4 sm:$0xff]  }
 0xa5e   : > { %2830 = vmatmul.mubr.bf16.vlgmr.msra.gmra.mxu1 %v6092_v48  ;;  %3243 = vmatpush1.bf16.msra.mxu0 %v4946_v51  ;;  %v4960_v48 = vld [vmem:[%s5898_s29 + $0xa4] ss:$16 sps:$4 sm:$0xff]   ;;  %s6424_s29 = sld [smem:[#allocation49_spill]] (!%p4237_p12) }
 0xa5f   : > { %3284 = vmatpush1.bf16.msra.mxu1 %v4949_v52  ;;  %3244 = vmatprep.subr.bf16.mxu0 %v4954_v53 }
 0xa60   : > { %3285 = vmatprep.subr.bf16.mxu1 %v4957_v54  ;;  %v6225_v54 = vshrl.u32 %v2000_v49, 7 }
 0xa62   : > { %3245 = vmatpush1.bf16.msra.mxu0 %v4952_v55 }
 0xa63   : > { %3286 = vmatpush1.bf16.msra.mxu1 %v4955_v46  ;;  %3246 = vmatprep.subr.bf16.mxu0 %v4960_v48 }
 0xa64   : > { %3287 = vmatprep.subr.bf16.mxu1 %v4963_v0 }
 0xa66   : > { %3247 = vmatpush1.bf16.msra.mxu0 %v4958_v56  ;;  %v2002_v56 = vsub.s32 0, %v6225_v54 }
 0xa67   : > { %3288 = vmatpush1.bf16.msra.mxu1 %v4961_v57  ;;  %3248 = vmatprep.subr.bf16.mxu0 %v4966_v47  ;;  %v1998_v57 = vld [vmem:[%s687_s8] sm:$0xf]  ;;  %v2006_v47 = vsub.s32 1, %v6225_v54 }
 0xa68   : > { %3289 = vmatprep.subr.bf16.mxu1 %v4969_v58  ;;  %v2003_v58 = vrot.slane %v1998_v57, %v2002_v56 }
 0xa6a   : > { %3249 = vmatpush1.bf16.msra.mxu0 %v4964_v59  ;;  %v2007_v59 = vrot.slane %v1998_v57, %v2006_v47 }
 0xa6b   : > { %3290 = vmatpush1.bf16.msra.mxu1 %v4967_v60  ;;  %3250 = vmatprep.subr.bf16.mxu0 %v4972_v61 }
 0xa6c   : > { %3291 = vmatprep.subr.bf16.mxu1 %v4975_v62 }
 0xa6e   : > { %3251 = vmatpush1.bf16.msra.mxu0 %v4970_v63 }
 0xa6f   : > { %3292 = vmatpush1.bf16.msra.mxu1 %v4973_v1  ;;  %3252 = vmatprep.subr.bf16.mxu0 %v4978_v2 }
 0xa70   : > { %3293 = vmatprep.subr.bf16.mxu1 %v4981_v4 }
 0xa72   : > { %3253 = vmatpush1.bf16.msra.mxu0 %v4976_v5 }
 0xa73   : > { %3294 = vmatpush1.bf16.msra.mxu1 %v4979_v6  ;;  %3254 = vmatprep.subr.bf16.mxu0 %v4984_v7 }
 0xa74   : > { %3295 = vmatprep.subr.bf16.mxu1 %v4987_v8 }
 0xa76   : > { %3255 = vmatpush1.bf16.msra.mxu0 %v4982_v9 }
 0xa77   : > { %3296 = vmatpush1.bf16.msra.mxu1 %v4985_v10  ;;  %3256 = vmatprep.subr.bf16.mxu0 %v4990_v11  ;;  %v2010_v10 = vsub.s32 2, %v6225_v54  ;;  %v2014_v11 = vsub.s32 3, %v6225_v54 }
 0xa78   : > { %3297 = vmatprep.subr.bf16.mxu1 %v4993_v12 }
 0xa79   : > { %v2011_v12 = vrot.slane %v1998_v57, %v2010_v10 }
 0xa7a   : > { %3257 = vmatpush1.bf16.msra.mxu0 %v4988_v14  ;;  %v2015_v14 = vrot.slane %v1998_v57, %v2014_v11 }
 0xa7b   : > { %3298 = vmatpush1.bf16.msra.mxu1 %v4991_v15  ;;  %3258 = vmatprep.subr.bf16.mxu0 %v4996_v17 }
 0xa7c   : > { %3299 = vmatprep.subr.bf16.mxu1 %v4999_v19 }
 0xa7e   : > { %3259 = vmatpush2.bf16.msra.mxu0 %v4994_v16 }
 0xa7f   : > { %3300 = vmatpush2.bf16.msra.mxu1 %v4997_v18  ;;  %3260 = vmatprep.subr.bf16.mxu0 %v5002_v20 }
 0xa80   : > { %3301 = vmatprep.subr.bf16.mxu1 %v5005_v21 }
 0xa82   : > { %3261 = vmatpush2.bf16.msra.mxu0 %v5000_v22 }
 0xa83   : > { %3302 = vmatpush2.bf16.msra.mxu1 %v5003_v23  ;;  %3262 = vmatprep.subr.bf16.mxu0 %v5008_v25 }
 0xa84   : > { %3303 = vmatprep.subr.bf16.mxu1 %v5011_v3 }
 0xa86   : > { %3263 = vmatpush2.bf16.msra.mxu0 %v5006_v26 }
 0xa87   : > { %3304 = vmatpush2.bf16.msra.mxu1 %v5009_v27  ;;  %3264 = vmatprep.subr.bf16.mxu0 %v5014_v28 }
 0xa88   : > { %3305 = vmatprep.subr.bf16.mxu1 %v5017_v29 }
 0xa8a   : > { %3265 = vmatpush2.bf16.msra.mxu0 %v5012_v30 }
 0xa8b   : > { %3306 = vmatpush2.bf16.msra.mxu1 %v5015_v31  ;;  %3266 = vmatprep.subr.bf16.mxu0 %v5020_v32 }
 0xa8c   : > { %3307 = vmatprep.subr.bf16.mxu1 %v5023_v33 }
 0xa8e   : > { %3267 = vmatpush2.bf16.msra.mxu0 %v5018_v34 }
 0xa8f   : > { %3308 = vmatpush2.bf16.msra.mxu1 %v5021_v35  ;;  %3268 = vmatprep.subr.bf16.mxu0 %v5026_v36  ;;  %v2854_v35 = vld [vmem:[#allocation4 + $0x8] sm:$0xff]  ;;  %v2856_v36 = vld [vmem:[#allocation4] sm:$0xff] }
 0xa90   : > { %3309 = vmatprep.subr.bf16.mxu1 %v5029_v37 }
 0xa92   : > { %3269 = vmatpush2.bf16.msra.mxu0 %v5024_v38 }
 0xa93   : > { %3310 = vmatpush2.bf16.msra.mxu1 %v5027_v13  ;;  %3270 = vmatprep.subr.bf16.mxu0 %v5032_v39  ;;  %v2855_v13 = vld [vmem:[#allocation4 + $0x10] sm:$0xff]  ;;  %v2857_v39 = vld [vmem:[#allocation4 + $0x18] sm:$0xff] }
 0xa94   : > { %3311 = vmatprep.subr.bf16.mxu1 %v5035_v40 }
 0xa96   : > { %3271 = vmatpush2.bf16.msra.mxu0 %v5030_v41 }
 0xa97   : > { %3312 = vmatpush2.bf16.msra.mxu1 %v5033_v42  ;;  %3272 = vmatprep.subr.bf16.mxu0 %v5038_v24 }
 0xa98   : > { %3313 = vmatprep.subr.bf16.mxu1 %v5041_v43 }
 0xa9a   : > { %3273 = vmatpush2.bf16.msra.mxu0 %v5036_v44 }
 0xa9b   : > { %3314 = vmatpush2.bf16.msra.mxu1 %v5039_v45 }
 0xadd   : > { %v2708_v50 = vpop.f32.mrf.mxu0 }
 0xade   : > { %v2749_v51 = vpop.f32.mrf.mxu1  ;;  %v2709_v60 = vadd.f32 %v2708_v50, %v2003_v58 }
 0xadf   : > { %v2710_v52 = vpop.f32.mrf.mxu0 }
 0xae0   : > { %v2751_v53 = vpop.f32.mrf.mxu1  ;;  %v2711_v61 = vadd.f32 %v2710_v52, %v2007_v59  ;;  %v2750_v62 = vadd.f32 %v2749_v51, %v2709_v60 }
 0xae1   : > { %v2712_v55 = vpop.f32.mrf.mxu0 }
 0xae2   : > { %v2753_v46 = vpop.f32.mrf.mxu1  ;;  %v2752_v63 = vadd.f32 %v2751_v53, %v2711_v61  ;;  %v2838_v1 = vsub.f32 0.0, %v2750_v62 }
 0xae3   : > { %v2713_v48 = vpop.f32.mrf.mxu0 }
 0xae4   : > { %v2754_v0 = vpop.f32.mrf.mxu1  ;;  %v2839_v2 = vsub.f32 0.0, %v2752_v63  ;;  %v2840_v4 = vmul.f32 1.442695, %v2838_v1 }
 0xae6   : > { %v2842_v5 = vmul.f32 1.442695, %v2839_v2  ;;  %5042 = vpow2.f32 %v2840_v4 }
 0xae8   : > { %5044 = vpow2.f32 %v2842_v5 }
 0xaf3   : > { %v5043_v6 = vpop.eup %5042 }
 0xaf4   : > { %v2844_v8 = vadd.f32 1.0, %v5043_v6 }
 0xaf5   : > { %v5045_v7 = vpop.eup %5044 }
 0xaf6   : > { %v2845_v9 = vadd.f32 1.0, %v5045_v7  ;;  %5046 = vrcp.f32 %v2844_v8 }
 0xaf8   : > { %5048 = vrcp.f32 %v2845_v9 }
 0xb03   : > { %v5047_v17 = vpop.eup %5046 }
 0xb04   : > { %v2848_v25 = vmul.f32 %v5047_v17, %v2750_v62 }
 0xb05   : > { %v5049_v19 = vpop.eup %5048 }
 0xb06   : > { %v2849_v27 = vmul.f32 %v5049_v19, %v2752_v63 }
 0xb1d   : > { %v2790_v15 = vpop.f32.mrf.mxu0 }
 0xb1e   : > { %v2831_v16 = vpop.f32.mrf.mxu1  ;;  %v2791_v18 = vadd.f32 %v2790_v15, %v2011_v12 }
 0xb1f   : > { %v2792_v20 = vpop.f32.mrf.mxu0 }
 0xb20   : > { %v2833_v21 = vpop.f32.mrf.mxu1  ;;  %v2832_v22 = vadd.f32 %v2831_v16, %v2791_v18  ;;  %v2793_v23 = vadd.f32 %v2792_v20, %v2015_v14 }
 0xb21   : > { %v2794_v3 = vpop.f32.mrf.mxu0 }
 0xb22   : > { %v2835_v26 = vpop.f32.mrf.mxu1  ;;  %v2834_v28 = vadd.f32 %v2833_v21, %v2793_v23  ;;  %v2850_v29 = vmul.f32 %v2848_v25, %v2832_v22 }
 0xb23   : > { %v2795_v30 = vpop.f32.mrf.mxu0 }
 0xb24   : > { %v2836_v31 = vpop.f32.mrf.mxu1  ;;  %v2851_v32 = vmul.f32 %v2849_v27, %v2834_v28  ;;  %v2852_v34 = vpack.c.bf16 %v2850_v29, %v2850_v29 }
 0xb26   : > { %v2853_v33 = vpack.c.bf16 %v2851_v32, %v2851_v32 }
 0xb28   : > { %3274 = vmatprep.mubr.bf16.mxu0 %v2853_v33  ;;  %3315 = vmatprep.mubr.bf16.mxu1 %v2853_v33 }
 0xb29   : > { %3275 = vmatmul.mubr.bf16.vlgmr.msra.gmra.mxu0 %v2852_v34  ;;  %3316 = vmatmul.mubr.bf16.vlgmr.msra.gmra.mxu1 %v2852_v34 }
 0xbe9   : > { %v3276_v37 = vpop.f32.mrf.mxu0  ;;  %v3317_v38 = vpop.f32.mrf.mxu1 }
 0xbea   : > { %v3324_v40 = vadd.f32 %v3276_v37, %v2854_v35  ;;  %v3326_v41 = vadd.f32 %v3317_v38, %v2856_v36 }
 0xbeb   : > { %v3278_v42 = vpop.f32.mrf.mxu0  ;;  %v3319_v24 = vpop.f32.mrf.mxu1  ;;  %3335 = sbr.rel (%p4237_p12) target bundleno = 3294 (0xcde), region = 124 }
 0xbec   : > { %3328 = vst [vmem:[#allocation4 + $0x8] sm:$0xff] %v3324_v40  ;;  %3330 = vst [vmem:[#allocation4] sm:$0xff] %v3326_v41  ;;  %v3325_v43 = vadd.f32 %v3278_v42, %v2855_v13  ;;  %v3327_v44 = vadd.f32 %v3319_v24, %v2857_v39 }
 0xbed   : > { %v3280_v45 = vpop.f32.mrf.mxu0  ;;  %v3321_v49 = vpop.f32.mrf.mxu1 }
 0xbee   : > { %3329 = vst [vmem:[#allocation4 + $0x10] sm:$0xff] %v3325_v43  ;;  %3331 = vst [vmem:[#allocation4 + $0x18] sm:$0xff] %v3327_v44 }
 0xbef   : > { %v3281_v50 = vpop.f32.mrf.mxu0  ;;  %v3322_v51 = vpop.f32.mrf.mxu1 }
 0xbf0   : > { %v5050_v52 = vld [vmem:[#allocation20 + $0x78] sm:$0xff]   ;;  %v5054_v48 = vld [vmem:[#allocation20 + $0x70] sm:$0xff]   ;;  %v5058_v59 = vld [vmem:[#allocation20 + $0x68] sm:$0xff]  }
 0xbf1   : > { %v5051_v53 = vld [vmem:[#allocation20 + $0xf8] sm:$0xff]   ;;  %4314 = vmatprep.subr.bf16.mxu0 %v5050_v52  ;;  %v5055_v0 = vld [vmem:[#allocation20 + $0xf0] sm:$0xff]   ;;  %v5059_v60 = vld [vmem:[#allocation20 + $0xe8] sm:$0xff]  }
 0xbf2   : > { %v5052_v55 = vld [vmem:[#allocation20 + $0x38] sm:$0xff]   ;;  %4336 = vmatprep.subr.bf16.mxu1 %v5051_v53  ;;  %v5056_v57 = vld [vmem:[#allocation20 + $0x30] sm:$0xff]   ;;  %v5060_v61 = vld [vmem:[#allocation20 + $0x28] sm:$0xff]  }
 0xbf3   : > { %v5053_v46 = vld [vmem:[#allocation20 + $0xb8] sm:$0xff]   ;;  %4315 = vmatpush3.bf16.msra.mxu0 %v5052_v55  ;;  %v5057_v58 = vld [vmem:[#allocation20 + $0xb0] sm:$0xff]   ;;  %v5061_v62 = vld [vmem:[#allocation20 + $0xa8] sm:$0xff]  }
 0xbf4   : > { %4337 = vmatpush3.bf16.msra.mxu1 %v5053_v46  ;;  %4316 = vmatprep.subr.bf16.mxu0 %v5054_v48  ;;  %v5062_v63 = vld [vmem:[#allocation20 + $0x60] sm:$0xff]   ;;  %v5066_v5 = vld [vmem:[#allocation20 + $0x58] sm:$0xff]   ;;  %v5070_v9 = vld [vmem:[#allocation20 + $0x50] sm:$0xff]  }
 0xbf5   : > { %4338 = vmatprep.subr.bf16.mxu1 %v5055_v0  ;;  %v5063_v1 = vld [vmem:[#allocation20 + $0xe0] sm:$0xff]   ;;  %v5067_v6 = vld [vmem:[#allocation20 + $0xd8] sm:$0xff]   ;;  %v5071_v12 = vld [vmem:[#allocation20 + $0xd0] sm:$0xff]  }
 0xbf6   : > { %v5064_v2 = vld [vmem:[#allocation20 + $0x20] sm:$0xff]   ;;  %v5068_v7 = vld [vmem:[#allocation20 + $0x18] sm:$0xff]   ;;  %v5072_v14 = vld [vmem:[#allocation20 + $0x10] sm:$0xff]  }
 0xbf7   : > { %4317 = vmatpush3.bf16.msra.mxu0 %v5056_v57  ;;  %v5065_v4 = vld [vmem:[#allocation20 + $0xa0] sm:$0xff]   ;;  %v5069_v8 = vld [vmem:[#allocation20 + $0x98] sm:$0xff]   ;;  %v5073_v15 = vld [vmem:[#allocation20 + $0x90] sm:$0xff]  }
 0xbf8   : > { %4339 = vmatpush3.bf16.msra.mxu1 %v5057_v58  ;;  %4318 = vmatprep.subr.bf16.mxu0 %v5058_v59  ;;  %v5074_v16 = vld [vmem:[#allocation20 + $0x48] sm:$0xff]   ;;  %v5078_v20 = vld [vmem:[#allocation20 + $0x40] sm:$0xff]   ;;  %v3340_v3 = vld [vmem:[%s6424_s29] sm:$0xf] }
 0xbf9   : > { %4340 = vmatprep.subr.bf16.mxu1 %v5059_v60  ;;  %v5075_v17 = vld [vmem:[#allocation20 + $0xc8] sm:$0xff]   ;;  %v5079_v21 = vld [vmem:[#allocation20 + $0xc0] sm:$0xff]   ;;  %v3349_v27 = vrot.slane %v3340_v3, %v2006_v47  ;;  %v3357_v28 = vrot.slane %v3340_v3, %v2014_v11  ;;  %v3336_v29 = vld [vmem:[#allocation4 + $0x8] sm:$0xff]  ;;  %v3345_v30 = vrot.slane %v3340_v3, %v2002_v56  ;;  %v3353_v32 = vrot.slane %v3340_v3, %v2010_v10 }
 0xbfa   : > { %v5076_v18 = vld [vmem:[#allocation20 + $0x8] sm:$0xff]   ;;  %v5080_v22 = vld [vmem:[#allocation20] sm:$0xff]   ;;  %v4238_v54 = vld [vmem:[%s6425_s26] ss:$0 sm:$0xff] }
 0xbfb   : > { %4319 = vmatpush3.bf16.msra.mxu0 %v5060_v61  ;;  %v5077_v19 = vld [vmem:[#allocation20 + $0x88] sm:$0xff]   ;;  %v5081_v23 = vld [vmem:[#allocation20 + $0x80] sm:$0xff]   ;;  %v3362_v35 = vadd.f32 %v3345_v30, %v3336_v29  ;;  %v3713_v44 = vld [vmem:[#allocation2] sm:$0xff] }
 0xbfc   : > { %4341 = vmatpush3.bf16.msra.mxu1 %v5061_v62  ;;  %4320 = vmatprep.subr.bf16.mxu0 %v5062_v63  ;;  %v3337_v25 = vld [vmem:[#allocation4 + $0x10] sm:$0xff]  ;;  %v3339_v26 = vld [vmem:[#allocation4 + $0x18] sm:$0xff]  ;;  %v3338_v31 = vld [vmem:[#allocation4] sm:$0xff] }
 0xbfd   : > { %4342 = vmatprep.subr.bf16.mxu1 %v5063_v1  ;;  %v3363_v33 = vadd.f32 %v3349_v27, %v3337_v25  ;;  %v3365_v34 = vadd.f32 %v3357_v28, %v3339_v26  ;;  %v3364_v36 = vadd.f32 %v3353_v32, %v3338_v31  ;;  %v3366_v13 = vpack.c.bf16 %v3362_v35, %v3362_v35 }
 0xbff   : > { %4321 = vmatpush3.bf16.msra.mxu0 %v5064_v2  ;;  %v3367_v37 = vpack.c.bf16 %v3363_v33, %v3363_v33  ;;  %v3369_v38 = vpack.c.bf16 %v3365_v34, %v3365_v34  ;;  %v3368_v39 = vpack.c.bf16 %v3364_v36, %v3364_v36 }
 0xc00   : > { %4343 = vmatpush3.bf16.msra.mxu1 %v5065_v4  ;;  %4322 = vmatprep.subr.bf16.mxu0 %v5066_v5 }
 0xc01   : > { %4344 = vmatprep.subr.bf16.mxu1 %v5067_v6  ;;  %3665 = vmatprep.mubr.bf16.mxu0 %v3367_v37 }
 0xc02   : > { %3705 = vmatprep.mubr.bf16.mxu1 %v3369_v38 }
 0xc03   : > { %4323 = vmatpush3.bf16.msra.mxu0 %v5068_v7 }
 0xc04   : > { %4345 = vmatpush3.bf16.msra.mxu1 %v5069_v8  ;;  %4324 = vmatprep.subr.bf16.mxu0 %v5070_v9 }
 0xc05   : > { %4346 = vmatprep.subr.bf16.mxu1 %v5071_v12 }
 0xc07   : > { %4325 = vmatpush3.bf16.msra.mxu0 %v5072_v14 }
 0xc08   : > { %4347 = vmatpush3.bf16.msra.mxu1 %v5073_v15  ;;  %4326 = vmatprep.subr.bf16.mxu0 %v5074_v16 }
 0xc09   : > { %4348 = vmatprep.subr.bf16.mxu1 %v5075_v17 }
 0xc0b   : > { %4327 = vmatpush3.bf16.msra.mxu0 %v5076_v18 }
 0xc0c   : > { %4349 = vmatpush3.bf16.msra.mxu1 %v5077_v19  ;;  %4328 = vmatprep.subr.bf16.mxu0 %v5078_v20 }
 0xc0d   : > { %4350 = vmatprep.subr.bf16.mxu1 %v5079_v21 }
 0xc0f   : > { %4329 = vmatpush3.bf16.msra.mxu0 %v5080_v22 }
 0xc10   : > { %4351 = vmatpush3.bf16.msra.mxu1 %v5081_v23 }
 0xc12   : > { %3666 = vmatmul.mubr.bf16.vlgmr.msra.gmra.mxu0 %v3366_v13 }
 0xc13   : > { %3706 = vmatmul.mubr.bf16.vlgmr.msra.gmra.mxu1 %v3368_v39 }
 0xcd2   : > { %v4330_v47 = vpop.f32.mrf.mxu0 }
 0xcd3   : > { %v4352_v11 = vpop.f32.mrf.mxu1 }
 0xcd4   : > { %v4331_v56 = vpop.f32.mrf.mxu0 }
 0xcd5   : > { %v4353_v10 = vpop.f32.mrf.mxu1  ;;  %v4332_v40 = vadd.f32 %v4331_v56, %v4330_v47 }
 0xcd6   : > { %v4333_v41 = vpop.f32.mrf.mxu0  ;;  %v4354_v43 = vadd.f32 %v4353_v10, %v4352_v11 }
 0xcd7   : > { %v4355_v42 = vpop.f32.mrf.mxu1  ;;  %v3668_v24 = vadd.f32 %v4332_v40, %v4238_v54 }
 0xcd8   : > { %v4334_v45 = vpop.f32.mrf.mxu0 }
 0xcd9   : > { %v4356_v49 = vpop.f32.mrf.mxu1  ;;  %v3708_v50 = vadd.f32 %v4354_v43, %v3668_v24 }
 0xcdb   : > { %v3714_v51 = vadd.f32 %v3713_v44, %v3708_v50 }
 0xcdd   : > { %3715 = vst [vmem:[%s5911_s20] sm:$0xff] %v3714_v51 }
 0xcde PF: > { %s6426_s6 = sld [smem:[#allocation32_spill]]  ;;  %s3730_s12 = sshll.u32 %s5911_s20, 4  ;;  %s3731_s12 = int_to_ptr.vmem [resolvable:$true] %s3730_s12 }
 0xcdf   : > { %s6427_s18 = sld [smem:[#allocation52_spill]]  ;;  %s3717_s0 = scalar_lea.sflag [#allocation7], %s5870_s13 }
 0xce0   : > { %s5348_s9 = scalar_lea.vmem %s3731_s12, 128  ;;  %s5513_s1 = smov [#allocation22]  }
 0xce1   : > { %p5349_p3 = scmp.ne.s32.totalorder %s3731_s12, %s5348_s9  ;;  %s5352_s19 = sshll.u32 %s5513_s1, 4  ;;  %s5353_s19 = int_to_ptr.vmem [resolvable:$false] %s5352_s19 }
 0xce2   : > { %s5354_s14 = scalar_lea.vmem %s5353_s19, 256  ;;  %p5355_p5 = scmp.lt.s32.totalorder %s3731_s12, %s5353_s19 }
 0xce3   : > { %p5350_p0 = pnand %p5349_p3, %p5821_p7  ;;  %p5356_p9 = scmp.lt.s32.totalorder %s5354_s14, %s5348_s9 }
 0xce4   : > { %s4272_s22 = sshll.u32 %s6426_s6, 7 }
 0xce5   : > { %s6428_s3 = smov %s6427_s18  ;;  %s3728_s27 = scalar_lea.hbm %s6427_s18, %s4272_s22 }
 0xce6   : > { %p5351_p6 = pneg %p5350_p0  ;;  %p5357_p11 = por %p5356_p9, %p5355_p5 }
 0xce8   : > { %p5358_p8 = pnand %p5357_p11, %p5351_p6 }
 0xcea   : > { %5361 = shalt.err (!%p5358_p8)
}
 0xceb   : > { %s5362_s11 = scalar_lea.hbm %s3728_s27, 128  ;;  %s5366_s2 = scalar_lea.hbm %s6428_s3, 256 }
 0xcec   : > { %p5363_p4 = scmp.ne.s32.totalorder %s3728_s27, %s5362_s11  ;;  %p5367_p1 = scmp.lt.s32.totalorder %s3728_s27, %s6428_s3 }
 0xced   : > { %p5368_p12 = scmp.lt.s32.totalorder %s5366_s2, %s5362_s11 }
 0xcee   : > { %p5364_p13 = pnand %p5363_p4, %p5821_p7 }
 0xcef   : > { %p5369_p3 = por %p5368_p12, %p5367_p1 }
 0xcf0   : > { %p5365_p2 = pneg %p5364_p13 }
 0xcf2   : > { %p5370_p0 = pnand %p5369_p3, %p5365_p2 }
 0xcf4   : > { %5373 = shalt.err (!%p5370_p0)
}
 0xcf5   : > { %4480 = dma.vmem_to_hbm [thread:$0]  (%p5821_p7), %s3731_s12, 128, %s3728_s27, %s3717_s0  }
 0xcf6 PF: > { %p4533_p6 = scmp.ge.s32.totalorder %s5488_s23, 2  ;;  %s3742_s7 = sand.u32 1, %s5460_s16  }
 0xcf7   : > { %s3743_s26 = scalar_lea.sflag [#allocation7], %s3742_s7 }
 0xcf8   : > { %p4515_p5 = pnand %p4533_p6, %p5832_p10 }
 0xcfa   : > { %p4516_p9 = pneg %p4515_p5 }
 0xcfc   : > { %5443 = dma.done.wait (%p4516_p9), %s3743_s26, 128  }
 0xcfd   : > { %5445 = vsyncadd (%p4516_p9), %s3743_s26, 4294967168  ;;  %s37_s23 = sadd.s32 1, %s5488_s23   ;;  %s6429_s25 = sld [smem:[#allocation30_spill]] }
 0xcfe   : > { %p34_p11 = scmp.ge.s32.totalorder %s37_s23, 6   ;;  %s6430_s18 = sld [smem:[#allocation38_spill]] }
 0xcff   : > { %s6431_s20 = sld [smem:[#allocation33_spill]]  ;;  %s6434_s29 = smov %s5452_s30 }
 0xd00   : > { %s6432_s6 = sld [smem:[#allocation36_spill]]  ;;  %s6435_s30 = smov %s5456_s15 }
 0xd01   : > { %s6433_s22 = sld [smem:[#allocation37_spill]]  ;;  %s6436_s15 = smov %s5813_s5 }
 0xd02   : > { %s6437_s16 = smov %s5464_s17  ;;  %s6439_s19 = smov %s5480_s21 }
 0xd03   : > { %s6438_s17 = smov %s6429_s25  ;;  %36 = sbr.rel (!%p34_p11) target bundleno = 30 (0x1e), region = 184 }
 0xd06   : > { %s6440_s21 = smov %s6432_s6 }
 0xd08   :  { %3748 = vsyncpa [#allocation6], 1 }
 0xd09   :  { %3750 = vsyncpa [#allocation6 + $0x1], 1 }
 0xd0a   :  { %3751 = vsyncpa [#allocation9], 1 }
 0xd0b   :  { %3752 = vsyncpa [#allocation12], 1 }
 0xd0c   :  { %3753 = vsyncpa [#allocation15], 1 }
 0xd0d   :  { %3754 = vsyncpa [#allocation18], 1 }
 0xd0e   :  { %3756 = vsyncpa [#allocation18 + $0x1], 1 }
 0xd0f   :  { %3757 = vsyncpa [#allocation21], 1 }
 0xd10   :  { %3758 = vsyncpa [#allocation7], 1 }
 0xd11   :  { %3760 = vsyncpa [#allocation7 + $0x1], 1 }

</bundles_post_ra>
